<compile_context>
chip_gen: v7x
topology: tpu7x:2x2x1
jax: 0.10.0
libtpu: 0.0.40
codegen_flags: <defaults>
</compile_context>

<pallas_src>
import math

import jax
import jax.numpy as jnp
from jax.experimental import pallas as pl
from jax.experimental.pallas import tpu as pltpu

# ---------------- config (small shapes consistent with the module) -----------
VOCAB = 32       # vocab_size
EMBED = 16       # embed_size
HIDDEN = 32      # hidden_dim
N_Z = 8          # n_z
B = 2            # batch
S_ENC = 8        # encoder sequence length
S_DEC = 8        # decoder sequence length

_VMEM = pl.BlockSpec(memory_space=pltpu.MemorySpace.VMEM)

# ---------------- packed-parameter buffer row layout ([336, 256] f32) --------
R_ENC_TBL = 0      # [2V=64, 8H=256]  enc_emb @ W_ih (fwd|bwd), per-gate interleaved
R_WHH_E   = 64     # [2H=64, 8H=256]  block-diag recurrent weight (fwd|bwd)
R_B_E     = 128    # [1, 8H]          encoder gate bias (b_ih + b_hh), interleaved
R_DEC_TBL = 136    # [V=32, 4H=128]   dec_emb @ W_ih_x
R_WIH_Z   = 168    # [NZ=8, 4H=128]   decoder z -> gates
R_WHH_D   = 176    # [H=32, 4H=128]   decoder recurrent weight
R_BD      = 208    # [1, 4H]          decoder gate bias
R_WMULV   = 216    # [2H=64, 2NZ=16]  hidden -> [mu | logvar]
R_BMULV   = 280    # [1, 2NZ]
R_WOUT    = 288    # [H=32, V=32]     output_layer weight
R_BOUT    = 320    # [1, V]           output_layer bias
R_EPS     = 328    # [B=2, NZ]        reparameterization noise
PBUF_ROWS = 336


# ---------------- generic LSTM cell (gate order i, f, g, o; width W per gate) -
def _lstm_cell(gates, c, W):
    # Full-vreg activations (one sigmoid + one tanh over the whole gate row),
    # then static lane slices — 2 EUP pushes per step instead of 4.
    sg = jax.nn.sigmoid(gates)
    tg = jnp.tanh(gates)
    i = sg[:, 0:W]
    f = sg[:, W:2 * W]
    g = tg[:, 2 * W:3 * W]
    o = sg[:, 3 * W:4 * W]
    c_new = f * c + i * g
    h_new = o * jnp.tanh(c_new)
    return h_new, c_new


# ---------------- fused VAE forward kernel -----------------------------------
def vae_kernel(enc_ids_ref,        # [S*B, 2] int32: (id[t], id[S-1-t]) time-major
               dec_ids_ref,        # [T*B, 1] int32: decoder ids, time-major
               pbuf_ref,           # [336, 256] f32 packed weights / biases / eps
               mulv_ref,           # out: [B, 2*n_z]  (mu | logvar)
               logp_ref):          # out: [T*B, V]    log-probs (time-major)
    H, V, NZ, Bb, S, T = HIDDEN, VOCAB, N_Z, B, S_ENC, S_DEC
    f32 = jnp.float32
    bf16 = jnp.bfloat16

    # ---- encoder: one-hot(token) x (emb @ W_ih) fuses gather + input matmul;
    #      fwd/bwd directions packed into per-gate-interleaved 8H lanes.
    enc_ids = enc_ids_ref[...]
    iota_e = jax.lax.broadcasted_iota(jnp.int32, (S * Bb, V), 1)
    oh_f = jnp.where(enc_ids[:, 0:1] == iota_e, 1.0, 0.0).astype(bf16)
    oh_b = jnp.where(enc_ids[:, 1:2] == iota_e, 1.0, 0.0).astype(bf16)
    oh2 = jnp.concatenate([oh_f, oh_b], axis=1)                     # [S*B, 2V]

    enc_tbl = pbuf_ref[R_ENC_TBL:R_ENC_TBL + 2 * V, :].astype(bf16)  # [2V, 8H]
    whh_e = pbuf_ref[R_WHH_E:R_WHH_E + 2 * H, :].astype(bf16)        # [2H, 8H]
    b_e = pbuf_ref[R_B_E:R_B_E + 1, :]                               # [1, 8H]

    xg_e = jnp.dot(oh2, enc_tbl, preferred_element_type=f32) + b_e   # [S*B, 8H]

    h_cat = jnp.zeros((Bb, 2 * H), f32)       # [h_f | h_b]
    c_cat = jnp.zeros((Bb, 2 * H), f32)
    for t in range(S):                         # fully unrolled; one 256-wide
        g = xg_e[t * Bb:(t + 1) * Bb, :] + jnp.dot(   # recurrent matmul / step
            h_cat.astype(bf16), whh_e, preferred_element_type=f32)
        h_cat, c_cat = _lstm_cell(g, c_cat, 2 * H)

    # ---- h_last = cat(h_f, h_b) = h_cat; Linear(2H -> [mu|logvar]) fused
    wmulv = pbuf_ref[R_WMULV:R_WMULV + 2 * H, 0:2 * NZ]
    bmulv = pbuf_ref[R_BMULV:R_BMULV + 1, 0:2 * NZ]
    mulv = jnp.dot(h_cat, wmulv, preferred_element_type=f32) + bmulv  # [B, 2NZ]
    mulv_ref[...] = mulv
    mu = mulv[:, 0:NZ]
    logvar = mulv[:, NZ:2 * NZ]

    # ---- reparameterization in-kernel: z = mu + eps * exp(0.5 * logvar)
    eps = pbuf_ref[R_EPS:R_EPS + Bb, 0:NZ]
    z = mu + eps * jnp.exp(0.5 * logvar)

    # ---- decoder: hoisted x-gate matmul; constant z/bias contribution
    #      pre-added before the recurrence
    dec_tbl = pbuf_ref[R_DEC_TBL:R_DEC_TBL + V, 0:4 * H].astype(bf16)
    wih_z = pbuf_ref[R_WIH_Z:R_WIH_Z + NZ, 0:4 * H].astype(bf16)
    whh_d = pbuf_ref[R_WHH_D:R_WHH_D + H, 0:4 * H].astype(bf16)
    bd = pbuf_ref[R_BD:R_BD + 1, 0:4 * H]

    dec_ids = dec_ids_ref[...]
    iota_d = jax.lax.broadcasted_iota(jnp.int32, (T * Bb, V), 1)
    oh_d = jnp.where(dec_ids[:, 0:1] == iota_d, 1.0, 0.0).astype(bf16)  # [T*B, V]
    xg_d = jnp.dot(oh_d, dec_tbl, preferred_element_type=f32)           # [T*B, 4H]
    zg = jnp.dot(z.astype(bf16), wih_z, preferred_element_type=f32) + bd  # [B, 4H]
    xg_d = xg_d + jnp.concatenate([zg] * T, axis=0)   # constant over time

    h = jnp.zeros((Bb, H), f32)
    c = jnp.zeros((Bb, H), f32)
    hs = []                                    # keep h history in vregs
    for t in range(T):
        g = xg_d[t * Bb:(t + 1) * Bb, :] + jnp.dot(
            h.astype(bf16), whh_d, preferred_element_type=f32)
        h, c = _lstm_cell(g, c, H)
        hs.append(h)
    h_all = jnp.concatenate(hs, axis=0)                                # [T*B, H]

    # ---- batched output projection + log_softmax AFTER the recurrence
    wout = pbuf_ref[R_WOUT:R_WOUT + H, 0:V].astype(bf16)
    bout = pbuf_ref[R_BOUT:R_BOUT + 1, 0:V]
    logits = jnp.dot(h_all.astype(bf16), wout, preferred_element_type=f32) + bout
    m = jnp.max(logits, axis=-1, keepdims=True)
    lse = m + jnp.log(jnp.sum(jnp.exp(logits - m), axis=-1, keepdims=True))
    logp_ref[...] = logits - lse                                       # LogSoftmax(dim=2)


# ---------------- deterministic parameter init (shapes from __init__) --------
def init_vae_params(key):
    ks = jax.random.split(key, 18)

    def u(k, shape, fan):
        bound = 1.0 / math.sqrt(fan)
        return jax.random.uniform(k, shape, jnp.float32, -bound, bound)

    p = {}
    p["enc_emb"] = 0.1 * jax.random.normal(ks[0], (VOCAB, EMBED), jnp.float32)
    p["dec_emb"] = 0.1 * jax.random.normal(ks[1], (VOCAB, EMBED), jnp.float32)
    # bidirectional encoder LSTM (weights stored transposed: [in, 4H], gates i,f,g,o)
    p["wih_f"] = u(ks[2], (EMBED, 4 * HIDDEN), HIDDEN)
    p["whh_f"] = u(ks[3], (HIDDEN, 4 * HIDDEN), HIDDEN)
    p["bf"]    = u(ks[4], (1, 4 * HIDDEN), HIDDEN)          # b_ih + b_hh combined
    p["wih_b"] = u(ks[5], (EMBED, 4 * HIDDEN), HIDDEN)
    p["whh_b"] = u(ks[6], (HIDDEN, 4 * HIDDEN), HIDDEN)
    p["bb"]    = u(ks[7], (1, 4 * HIDDEN), HIDDEN)
    # hidden_to_mu / hidden_to_logvar : Linear(2*HIDDEN, N_Z)
    p["wmu"]   = u(ks[8],  (2 * HIDDEN, N_Z), 2 * HIDDEN)
    p["bmu"]   = u(ks[9],  (1, N_Z), 2 * HIDDEN)
    p["wlv"]   = u(ks[10], (2 * HIDDEN, N_Z), 2 * HIDDEN)
    p["blv"]   = u(ks[11], (1, N_Z), 2 * HIDDEN)
    # decoder LSTM: input_size = EMBED + N_Z, stored split into x- and z- parts
    p["wih_x"] = u(ks[12], (EMBED, 4 * HIDDEN), HIDDEN)
    p["wih_z"] = u(ks[13], (N_Z, 4 * HIDDEN), HIDDEN)
    p["whh_d"] = u(ks[14], (HIDDEN, 4 * HIDDEN), HIDDEN)
    p["bd"]    = u(ks[15], (1, 4 * HIDDEN), HIDDEN)
    # output_layer: Linear(HIDDEN, VOCAB)
    p["wout"]  = u(ks[16], (HIDDEN, VOCAB), HIDDEN)
    p["bout"]  = u(ks[17], (1, VOCAB), HIDDEN)
    return p


# ---------------- wrapper-side parameter packing ------------------------------
def _pack_params(params, eps):
    H = HIDDEN

    def interleave(wf, wb):
        # [R, 4H] x2 (gate order i,f,g,o) -> [R, 8H] = [i_f,i_b,f_f,f_b,g_f,g_b,o_f,o_b]
        r = wf.shape[0]
        return jnp.stack([wf.reshape(r, 4, H), wb.reshape(r, 4, H)],
                         axis=2).reshape(r, 8 * H)

    # embedding composed with input-to-gate weights (exact: onehot @ (E @ W))
    tf = params["enc_emb"] @ params["wih_f"]                        # [V, 4H]
    tb = params["enc_emb"] @ params["wih_b"]                        # [V, 4H]
    enc_tbl = jnp.concatenate(
        [interleave(tf, jnp.zeros_like(tf)),
         interleave(jnp.zeros_like(tb), tb)], axis=0)               # [2V, 8H]
    whh_e = jnp.concatenate(
        [interleave(params["whh_f"], jnp.zeros_like(params["whh_f"])),
         interleave(jnp.zeros_like(params["whh_b"]), params["whh_b"])],
        axis=0)                                                     # [2H, 8H]
    b_e = interleave(params["bf"], params["bb"])                    # [1, 8H]
    dec_tbl = params["dec_emb"] @ params["wih_x"]                   # [V, 4H]
    wmulv = jnp.concatenate([params["wmu"], params["wlv"]], axis=1)  # [2H, 2NZ]
    bmulv = jnp.concatenate([params["bmu"], params["blv"]], axis=1)  # [1, 2NZ]

    def put(buf, row, arr):
        r, c = arr.shape
        return buf.at[row:row + r, 0:c].set(arr.astype(jnp.float32))

    buf = jnp.zeros((PBUF_ROWS, 8 * HIDDEN), jnp.float32)
    buf = put(buf, R_ENC_TBL, enc_tbl)
    buf = put(buf, R_WHH_E, whh_e)
    buf = put(buf, R_B_E, b_e)
    buf = put(buf, R_DEC_TBL, dec_tbl)
    buf = put(buf, R_WIH_Z, params["wih_z"])
    buf = put(buf, R_WHH_D, params["whh_d"])
    buf = put(buf, R_BD, params["bd"])
    buf = put(buf, R_WMULV, wmulv)
    buf = put(buf, R_BMULV, bmulv)
    buf = put(buf, R_WOUT, params["wout"])
    buf = put(buf, R_BOUT, params["bout"])
    buf = put(buf, R_EPS, eps)
    return buf


# ---------------- wrapper: VAE.forward(input_ids, attention_mask, x_dec) -----
def vae_forward(params, input_ids, attention_mask, x_dec, eps):
    del attention_mask  # unused in the LSTM-encoder path (matches torch code)

    # token-id plumbing only — embedding lookups happen in-kernel
    ids_tm = jnp.transpose(input_ids).astype(jnp.int32)             # [S, B] time-major
    enc_ids = jnp.stack([ids_tm, jnp.flip(ids_tm, axis=0)],
                        axis=-1).reshape(S_ENC * B, 2)              # (fwd id, bwd id)
    dec_ids = jnp.transpose(x_dec).astype(jnp.int32).reshape(S_DEC * B, 1)

    pbuf = _pack_params(params, eps)                                # single param DMA

    mulv, logp_flat = pl.pallas_call(
        vae_kernel,
        out_shape=(jax.ShapeDtypeStruct((B, 2 * N_Z), jnp.float32),
                   jax.ShapeDtypeStruct((S_DEC * B, VOCAB), jnp.float32)),
        in_specs=[_VMEM, _VMEM, _VMEM],
        out_specs=(_VMEM, _VMEM),
    )(enc_ids, dec_ids, pbuf)

    mu = mulv[:, :N_Z]
    logvar = mulv[:, N_Z:]
    log_prob = jnp.transpose(logp_flat.reshape(S_DEC, B, VOCAB), (1, 0, 2))  # [B, T, V]
    return log_prob, mu, logvar


if __name__ == "__main__":
    key = jax.random.PRNGKey(0)
    k_par, k_ids, k_dec, k_eps = jax.random.split(key, 4)

    params = init_vae_params(k_par)
    input_ids = jax.random.randint(k_ids, (B, S_ENC), 0, VOCAB, dtype=jnp.int32)
    attention_mask = jnp.ones((B, S_ENC), dtype=jnp.int32)
    x_dec = jax.random.randint(k_dec, (B, S_DEC), 0, VOCAB, dtype=jnp.int32)
    # eps ~ randn_like(std) from the reparameterization trick (drawn in glue)
    eps = jax.random.normal(k_eps, (B, N_Z), dtype=jnp.float32)

    log_prob, mu, logvar = jax.jit(vae_forward)(params, input_ids,
                                                attention_mask, x_dec, eps)
    jax.block_until_ready((log_prob, mu, logvar))

    assert log_prob.shape == (B, S_DEC, VOCAB)
    assert mu.shape == (B, N_Z) and logvar.shape == (B, N_Z)
    assert bool(jnp.all(jnp.isfinite(log_prob)))
    assert bool(jnp.all(jnp.isfinite(mu))) and bool(jnp.all(jnp.isfinite(logvar)))
    # rows of exp(log_prob) must sum to 1 (log_softmax check)
    assert bool(jnp.allclose(jnp.exp(log_prob).sum(-1), 1.0, atol=1e-4))
    print("KERNEL_OK")
</pallas_src>

<mosaic_0001>
module attributes {stable_mosaic.version = 11 : i64} {
  func.func @vae_kernel(%arg0: memref<16x2xi32, #tpu.memory_space<vmem>>, %arg1: memref<16x1xi32, #tpu.memory_space<vmem>>, %arg2: memref<336x256xf32, #tpu.memory_space<vmem>>, %arg3: memref<2x16xf32, #tpu.memory_space<vmem>>, %arg4: memref<16x32xf32, #tpu.memory_space<vmem>>) attributes {dimension_semantics = [], scalar_prefetch = 0 : i64, scratch_operands = 0 : i64, tpu.core_type = #tpu.core_type<tc>} {
    %c0 = arith.constant 0 : index
    %c0_0 = arith.constant 0 : index
    %0 = vector.load %arg0[%c0, %c0_0] : memref<16x2xi32, #tpu.memory_space<vmem>>, vector<16x2xi32>
    %1 = tpu.iota {dimensions = array<i32: 1>} : vector<16x32xi32>
    %2 = vector.extract_strided_slice %0 {offsets = [0, 0], sizes = [16, 1], strides = [1, 1]} : vector<16x2xi32> to vector<16x1xi32>
    %3 = vector.broadcast %2 : vector<16x1xi32> to vector<16x32xi32>
    %4 = arith.cmpi eq, %3, %1 : vector<16x32xi32>
    %cst = arith.constant 1.000000e+00 : f32
    %cst_1 = arith.constant 0.000000e+00 : f32
    %5 = vector.broadcast %cst : f32 to vector<16x32xf32>
    %6 = vector.broadcast %cst_1 : f32 to vector<16x32xf32>
    %7 = arith.select %4, %5, %6 : vector<16x32xi1>, vector<16x32xf32>
    %8 = arith.truncf %7 : vector<16x32xf32> to vector<16x32xbf16>
    %9 = vector.extract_strided_slice %0 {offsets = [0, 1], sizes = [16, 1], strides = [1, 1]} : vector<16x2xi32> to vector<16x1xi32>
    %10 = vector.broadcast %9 : vector<16x1xi32> to vector<16x32xi32>
    %11 = arith.cmpi eq, %10, %1 : vector<16x32xi32>
    %cst_2 = arith.constant 1.000000e+00 : f32
    %cst_3 = arith.constant 0.000000e+00 : f32
    %12 = vector.broadcast %cst_2 : f32 to vector<16x32xf32>
    %13 = vector.broadcast %cst_3 : f32 to vector<16x32xf32>
    %14 = arith.select %11, %12, %13 : vector<16x32xi1>, vector<16x32xf32>
    %15 = arith.truncf %14 : vector<16x32xf32> to vector<16x32xbf16>
    %16 = tpu.concatenate %8, %15 in 1 : vector<16x32xbf16>, vector<16x32xbf16> -> vector<16x64xbf16>
    %c0_4 = arith.constant 0 : index
    %c0_5 = arith.constant 0 : index
    %17 = vector.load %arg2[%c0_4, %c0_5] : memref<336x256xf32, #tpu.memory_space<vmem>>, vector<64x256xf32>
    %18 = arith.truncf %17 : vector<64x256xf32> to vector<64x256xbf16>
    %c64 = arith.constant 64 : index
    %c0_6 = arith.constant 0 : index
    %19 = vector.load %arg2[%c64, %c0_6] : memref<336x256xf32, #tpu.memory_space<vmem>>, vector<64x256xf32>
    %20 = arith.truncf %19 : vector<64x256xf32> to vector<64x256xbf16>
    %c128 = arith.constant 128 : index
    %c0_7 = arith.constant 0 : index
    %21 = vector.load %arg2[%c128, %c0_7] : memref<336x256xf32, #tpu.memory_space<vmem>>, vector<1x256xf32>
    %cst_8 = arith.constant dense<0.000000e+00> : vector<16x256xf32>
    %22 = tpu.matmul %16, %18, %cst_8 {dimension_numbers = #tpu.dot_dimension_numbers<[1], [0], [0], [1], [0, 0, 1, 1], [], []>} : vector<16x64xbf16>, vector<64x256xbf16>, vector<16x256xf32> -> vector<16x256xf32>
    %23 = vector.broadcast %21 : vector<1x256xf32> to vector<16x256xf32>
    %24 = arith.addf %22, %23 : vector<16x256xf32>
    %cst_9 = arith.constant 0.000000e+00 : f32
    %25 = vector.broadcast %cst_9 : f32 to vector<2x64xf32>
    %cst_10 = arith.constant 0.000000e+00 : f32
    %26 = vector.broadcast %cst_10 : f32 to vector<2x64xf32>
    %27 = vector.extract_strided_slice %24 {offsets = [0, 0], sizes = [2, 256], strides = [1, 1]} : vector<16x256xf32> to vector<2x256xf32>
    %28 = arith.truncf %25 : vector<2x64xf32> to vector<2x64xbf16>
    %cst_11 = arith.constant dense<0.000000e+00> : vector<2x256xf32>
    %29 = tpu.matmul %28, %20, %cst_11 {dimension_numbers = #tpu.dot_dimension_numbers<[1], [0], [0], [1], [0, 0, 1, 1], [], []>} : vector<2x64xbf16>, vector<64x256xbf16>, vector<2x256xf32> -> vector<2x256xf32>
    %30 = arith.addf %27, %29 : vector<2x256xf32>
    %31 = arith.negf %30 : vector<2x256xf32>
    %32 = math.exp %31 : vector<2x256xf32>
    %cst_12 = arith.constant 1.000000e+00 : f32
    %33 = vector.broadcast %cst_12 : f32 to vector<2x256xf32>
    %34 = arith.addf %33, %32 : vector<2x256xf32>
    %35 = arith.divf %33, %34 : vector<2x256xf32>
    %36 = math.tanh %30 : vector<2x256xf32>
    %37 = vector.extract_strided_slice %35 {offsets = [0, 0], sizes = [2, 64], strides = [1, 1]} : vector<2x256xf32> to vector<2x64xf32>
    %38 = vector.extract_strided_slice %35 {offsets = [0, 64], sizes = [2, 64], strides = [1, 1]} : vector<2x256xf32> to vector<2x64xf32>
    %39 = vector.extract_strided_slice %36 {offsets = [0, 128], sizes = [2, 64], strides = [1, 1]} : vector<2x256xf32> to vector<2x64xf32>
    %40 = vector.extract_strided_slice %35 {offsets = [0, 192], sizes = [2, 64], strides = [1, 1]} : vector<2x256xf32> to vector<2x64xf32>
    %41 = arith.mulf %38, %26 : vector<2x64xf32>
    %42 = arith.mulf %37, %39 : vector<2x64xf32>
    %43 = arith.addf %41, %42 : vector<2x64xf32>
    %44 = math.tanh %43 : vector<2x64xf32>
    %45 = arith.mulf %40, %44 : vector<2x64xf32>
    %46 = vector.extract_strided_slice %24 {offsets = [2, 0], sizes = [2, 256], strides = [1, 1]} : vector<16x256xf32> to vector<2x256xf32>
    %47 = arith.truncf %45 : vector<2x64xf32> to vector<2x64xbf16>
    %cst_13 = arith.constant dense<0.000000e+00> : vector<2x256xf32>
    %48 = tpu.matmul %47, %20, %cst_13 {dimension_numbers = #tpu.dot_dimension_numbers<[1], [0], [0], [1], [0, 0, 1, 1], [], []>} : vector<2x64xbf16>, vector<64x256xbf16>, vector<2x256xf32> -> vector<2x256xf32>
    %49 = arith.addf %46, %48 : vector<2x256xf32>
    %50 = arith.negf %49 : vector<2x256xf32>
    %51 = math.exp %50 : vector<2x256xf32>
    %cst_14 = arith.constant 1.000000e+00 : f32
    %52 = vector.broadcast %cst_14 : f32 to vector<2x256xf32>
    %53 = arith.addf %52, %51 : vector<2x256xf32>
    %54 = arith.divf %52, %53 : vector<2x256xf32>
    %55 = math.tanh %49 : vector<2x256xf32>
    %56 = vector.extract_strided_slice %54 {offsets = [0, 0], sizes = [2, 64], strides = [1, 1]} : vector<2x256xf32> to vector<2x64xf32>
    %57 = vector.extract_strided_slice %54 {offsets = [0, 64], sizes = [2, 64], strides = [1, 1]} : vector<2x256xf32> to vector<2x64xf32>
    %58 = vector.extract_strided_slice %55 {offsets = [0, 128], sizes = [2, 64], strides = [1, 1]} : vector<2x256xf32> to vector<2x64xf32>
    %59 = vector.extract_strided_slice %54 {offsets = [0, 192], sizes = [2, 64], strides = [1, 1]} : vector<2x256xf32> to vector<2x64xf32>
    %60 = arith.mulf %57, %43 : vector<2x64xf32>
    %61 = arith.mulf %56, %58 : vector<2x64xf32>
    %62 = arith.addf %60, %61 : vector<2x64xf32>
    %63 = math.tanh %62 : vector<2x64xf32>
    %64 = arith.mulf %59, %63 : vector<2x64xf32>
    %65 = vector.extract_strided_slice %24 {offsets = [4, 0], sizes = [2, 256], strides = [1, 1]} : vector<16x256xf32> to vector<2x256xf32>
    %66 = arith.truncf %64 : vector<2x64xf32> to vector<2x64xbf16>
    %cst_15 = arith.constant dense<0.000000e+00> : vector<2x256xf32>
    %67 = tpu.matmul %66, %20, %cst_15 {dimension_numbers = #tpu.dot_dimension_numbers<[1], [0], [0], [1], [0, 0, 1, 1], [], []>} : vector<2x64xbf16>, vector<64x256xbf16>, vector<2x256xf32> -> vector<2x256xf32>
    %68 = arith.addf %65, %67 : vector<2x256xf32>
    %69 = arith.negf %68 : vector<2x256xf32>
    %70 = math.exp %69 : vector<2x256xf32>
    %cst_16 = arith.constant 1.000000e+00 : f32
    %71 = vector.broadcast %cst_16 : f32 to vector<2x256xf32>
    %72 = arith.addf %71, %70 : vector<2x256xf32>
    %73 = arith.divf %71, %72 : vector<2x256xf32>
    %74 = math.tanh %68 : vector<2x256xf32>
    %75 = vector.extract_strided_slice %73 {offsets = [0, 0], sizes = [2, 64], strides = [1, 1]} : vector<2x256xf32> to vector<2x64xf32>
    %76 = vector.extract_strided_slice %73 {offsets = [0, 64], sizes = [2, 64], strides = [1, 1]} : vector<2x256xf32> to vector<2x64xf32>
    %77 = vector.extract_strided_slice %74 {offsets = [0, 128], sizes = [2, 64], strides = [1, 1]} : vector<2x256xf32> to vector<2x64xf32>
    %78 = vector.extract_strided_slice %73 {offsets = [0, 192], sizes = [2, 64], strides = [1, 1]} : vector<2x256xf32> to vector<2x64xf32>
    %79 = arith.mulf %76, %62 : vector<2x64xf32>
    %80 = arith.mulf %75, %77 : vector<2x64xf32>
    %81 = arith.addf %79, %80 : vector<2x64xf32>
    %82 = math.tanh %81 : vector<2x64xf32>
    %83 = arith.mulf %78, %82 : vector<2x64xf32>
    %84 = vector.extract_strided_slice %24 {offsets = [6, 0], sizes = [2, 256], strides = [1, 1]} : vector<16x256xf32> to vector<2x256xf32>
    %85 = arith.truncf %83 : vector<2x64xf32> to vector<2x64xbf16>
    %cst_17 = arith.constant dense<0.000000e+00> : vector<2x256xf32>
    %86 = tpu.matmul %85, %20, %cst_17 {dimension_numbers = #tpu.dot_dimension_numbers<[1], [0], [0], [1], [0, 0, 1, 1], [], []>} : vector<2x64xbf16>, vector<64x256xbf16>, vector<2x256xf32> -> vector<2x256xf32>
    %87 = arith.addf %84, %86 : vector<2x256xf32>
    %88 = arith.negf %87 : vector<2x256xf32>
    %89 = math.exp %88 : vector<2x256xf32>
    %cst_18 = arith.constant 1.000000e+00 : f32
    %90 = vector.broadcast %cst_18 : f32 to vector<2x256xf32>
    %91 = arith.addf %90, %89 : vector<2x256xf32>
    %92 = arith.divf %90, %91 : vector<2x256xf32>
    %93 = math.tanh %87 : vector<2x256xf32>
    %94 = vector.extract_strided_slice %92 {offsets = [0, 0], sizes = [2, 64], strides = [1, 1]} : vector<2x256xf32> to vector<2x64xf32>
    %95 = vector.extract_strided_slice %92 {offsets = [0, 64], sizes = [2, 64], strides = [1, 1]} : vector<2x256xf32> to vector<2x64xf32>
    %96 = vector.extract_strided_slice %93 {offsets = [0, 128], sizes = [2, 64], strides = [1, 1]} : vector<2x256xf32> to vector<2x64xf32>
    %97 = vector.extract_strided_slice %92 {offsets = [0, 192], sizes = [2, 64], strides = [1, 1]} : vector<2x256xf32> to vector<2x64xf32>
    %98 = arith.mulf %95, %81 : vector<2x64xf32>
    %99 = arith.mulf %94, %96 : vector<2x64xf32>
    %100 = arith.addf %98, %99 : vector<2x64xf32>
    %101 = math.tanh %100 : vector<2x64xf32>
    %102 = arith.mulf %97, %101 : vector<2x64xf32>
    %103 = vector.extract_strided_slice %24 {offsets = [8, 0], sizes = [2, 256], strides = [1, 1]} : vector<16x256xf32> to vector<2x256xf32>
    %104 = arith.truncf %102 : vector<2x64xf32> to vector<2x64xbf16>
    %cst_19 = arith.constant dense<0.000000e+00> : vector<2x256xf32>
    %105 = tpu.matmul %104, %20, %cst_19 {dimension_numbers = #tpu.dot_dimension_numbers<[1], [0], [0], [1], [0, 0, 1, 1], [], []>} : vector<2x64xbf16>, vector<64x256xbf16>, vector<2x256xf32> -> vector<2x256xf32>
    %106 = arith.addf %103, %105 : vector<2x256xf32>
    %107 = arith.negf %106 : vector<2x256xf32>
    %108 = math.exp %107 : vector<2x256xf32>
    %cst_20 = arith.constant 1.000000e+00 : f32
    %109 = vector.broadcast %cst_20 : f32 to vector<2x256xf32>
    %110 = arith.addf %109, %108 : vector<2x256xf32>
    %111 = arith.divf %109, %110 : vector<2x256xf32>
    %112 = math.tanh %106 : vector<2x256xf32>
    %113 = vector.extract_strided_slice %111 {offsets = [0, 0], sizes = [2, 64], strides = [1, 1]} : vector<2x256xf32> to vector<2x64xf32>
    %114 = vector.extract_strided_slice %111 {offsets = [0, 64], sizes = [2, 64], strides = [1, 1]} : vector<2x256xf32> to vector<2x64xf32>
    %115 = vector.extract_strided_slice %112 {offsets = [0, 128], sizes = [2, 64], strides = [1, 1]} : vector<2x256xf32> to vector<2x64xf32>
    %116 = vector.extract_strided_slice %111 {offsets = [0, 192], sizes = [2, 64], strides = [1, 1]} : vector<2x256xf32> to vector<2x64xf32>
    %117 = arith.mulf %114, %100 : vector<2x64xf32>
    %118 = arith.mulf %113, %115 : vector<2x64xf32>
    %119 = arith.addf %117, %118 : vector<2x64xf32>
    %120 = math.tanh %119 : vector<2x64xf32>
    %121 = arith.mulf %116, %120 : vector<2x64xf32>
    %122 = vector.extract_strided_slice %24 {offsets = [10, 0], sizes = [2, 256], strides = [1, 1]} : vector<16x256xf32> to vector<2x256xf32>
    %123 = arith.truncf %121 : vector<2x64xf32> to vector<2x64xbf16>
    %cst_21 = arith.constant dense<0.000000e+00> : vector<2x256xf32>
    %124 = tpu.matmul %123, %20, %cst_21 {dimension_numbers = #tpu.dot_dimension_numbers<[1], [0], [0], [1], [0, 0, 1, 1], [], []>} : vector<2x64xbf16>, vector<64x256xbf16>, vector<2x256xf32> -> vector<2x256xf32>
    %125 = arith.addf %122, %124 : vector<2x256xf32>
    %126 = arith.negf %125 : vector<2x256xf32>
    %127 = math.exp %126 : vector<2x256xf32>
    %cst_22 = arith.constant 1.000000e+00 : f32
    %128 = vector.broadcast %cst_22 : f32 to vector<2x256xf32>
    %129 = arith.addf %128, %127 : vector<2x256xf32>
    %130 = arith.divf %128, %129 : vector<2x256xf32>
    %131 = math.tanh %125 : vector<2x256xf32>
    %132 = vector.extract_strided_slice %130 {offsets = [0, 0], sizes = [2, 64], strides = [1, 1]} : vector<2x256xf32> to vector<2x64xf32>
    %133 = vector.extract_strided_slice %130 {offsets = [0, 64], sizes = [2, 64], strides = [1, 1]} : vector<2x256xf32> to vector<2x64xf32>
    %134 = vector.extract_strided_slice %131 {offsets = [0, 128], sizes = [2, 64], strides = [1, 1]} : vector<2x256xf32> to vector<2x64xf32>
    %135 = vector.extract_strided_slice %130 {offsets = [0, 192], sizes = [2, 64], strides = [1, 1]} : vector<2x256xf32> to vector<2x64xf32>
    %136 = arith.mulf %133, %119 : vector<2x64xf32>
    %137 = arith.mulf %132, %134 : vector<2x64xf32>
    %138 = arith.addf %136, %137 : vector<2x64xf32>
    %139 = math.tanh %138 : vector<2x64xf32>
    %140 = arith.mulf %135, %139 : vector<2x64xf32>
    %141 = vector.extract_strided_slice %24 {offsets = [12, 0], sizes = [2, 256], strides = [1, 1]} : vector<16x256xf32> to vector<2x256xf32>
    %142 = arith.truncf %140 : vector<2x64xf32> to vector<2x64xbf16>
    %cst_23 = arith.constant dense<0.000000e+00> : vector<2x256xf32>
    %143 = tpu.matmul %142, %20, %cst_23 {dimension_numbers = #tpu.dot_dimension_numbers<[1], [0], [0], [1], [0, 0, 1, 1], [], []>} : vector<2x64xbf16>, vector<64x256xbf16>, vector<2x256xf32> -> vector<2x256xf32>
    %144 = arith.addf %141, %143 : vector<2x256xf32>
    %145 = arith.negf %144 : vector<2x256xf32>
    %146 = math.exp %145 : vector<2x256xf32>
    %cst_24 = arith.constant 1.000000e+00 : f32
    %147 = vector.broadcast %cst_24 : f32 to vector<2x256xf32>
    %148 = arith.addf %147, %146 : vector<2x256xf32>
    %149 = arith.divf %147, %148 : vector<2x256xf32>
    %150 = math.tanh %144 : vector<2x256xf32>
    %151 = vector.extract_strided_slice %149 {offsets = [0, 0], sizes = [2, 64], strides = [1, 1]} : vector<2x256xf32> to vector<2x64xf32>
    %152 = vector.extract_strided_slice %149 {offsets = [0, 64], sizes = [2, 64], strides = [1, 1]} : vector<2x256xf32> to vector<2x64xf32>
    %153 = vector.extract_strided_slice %150 {offsets = [0, 128], sizes = [2, 64], strides = [1, 1]} : vector<2x256xf32> to vector<2x64xf32>
    %154 = vector.extract_strided_slice %149 {offsets = [0, 192], sizes = [2, 64], strides = [1, 1]} : vector<2x256xf32> to vector<2x64xf32>
    %155 = arith.mulf %152, %138 : vector<2x64xf32>
    %156 = arith.mulf %151, %153 : vector<2x64xf32>
    %157 = arith.addf %155, %156 : vector<2x64xf32>
    %158 = math.tanh %157 : vector<2x64xf32>
    %159 = arith.mulf %154, %158 : vector<2x64xf32>
    %160 = vector.extract_strided_slice %24 {offsets = [14, 0], sizes = [2, 256], strides = [1, 1]} : vector<16x256xf32> to vector<2x256xf32>
    %161 = arith.truncf %159 : vector<2x64xf32> to vector<2x64xbf16>
    %cst_25 = arith.constant dense<0.000000e+00> : vector<2x256xf32>
    %162 = tpu.matmul %161, %20, %cst_25 {dimension_numbers = #tpu.dot_dimension_numbers<[1], [0], [0], [1], [0, 0, 1, 1], [], []>} : vector<2x64xbf16>, vector<64x256xbf16>, vector<2x256xf32> -> vector<2x256xf32>
    %163 = arith.addf %160, %162 : vector<2x256xf32>
    %164 = arith.negf %163 : vector<2x256xf32>
    %165 = math.exp %164 : vector<2x256xf32>
    %cst_26 = arith.constant 1.000000e+00 : f32
    %166 = vector.broadcast %cst_26 : f32 to vector<2x256xf32>
    %167 = arith.addf %166, %165 : vector<2x256xf32>
    %168 = arith.divf %166, %167 : vector<2x256xf32>
    %169 = math.tanh %163 : vector<2x256xf32>
    %170 = vector.extract_strided_slice %168 {offsets = [0, 0], sizes = [2, 64], strides = [1, 1]} : vector<2x256xf32> to vector<2x64xf32>
    %171 = vector.extract_strided_slice %168 {offsets = [0, 64], sizes = [2, 64], strides = [1, 1]} : vector<2x256xf32> to vector<2x64xf32>
    %172 = vector.extract_strided_slice %169 {offsets = [0, 128], sizes = [2, 64], strides = [1, 1]} : vector<2x256xf32> to vector<2x64xf32>
    %173 = vector.extract_strided_slice %168 {offsets = [0, 192], sizes = [2, 64], strides = [1, 1]} : vector<2x256xf32> to vector<2x64xf32>
    %174 = arith.mulf %171, %157 : vector<2x64xf32>
    %175 = arith.mulf %170, %172 : vector<2x64xf32>
    %176 = arith.addf %174, %175 : vector<2x64xf32>
    %177 = math.tanh %176 : vector<2x64xf32>
    %178 = arith.mulf %173, %177 : vector<2x64xf32>
    %c216 = arith.constant 216 : index
    %c0_27 = arith.constant 0 : index
    %179 = vector.load %arg2[%c216, %c0_27] : memref<336x256xf32, #tpu.memory_space<vmem>>, vector<64x16xf32>
    %c280 = arith.constant 280 : index
    %c0_28 = arith.constant 0 : index
    %180 = vector.load %arg2[%c280, %c0_28] : memref<336x256xf32, #tpu.memory_space<vmem>>, vector<1x16xf32>
    %cst_29 = arith.constant dense<0.000000e+00> : vector<2x16xf32>
    %181 = tpu.matmul %178, %179, %cst_29 {dimension_numbers = #tpu.dot_dimension_numbers<[1], [0], [0], [1], [0, 0, 1, 1], [], []>} : vector<2x64xf32>, vector<64x16xf32>, vector<2x16xf32> -> vector<2x16xf32>
    %182 = vector.broadcast %180 : vector<1x16xf32> to vector<2x16xf32>
    %183 = arith.addf %181, %182 : vector<2x16xf32>
    %c0_30 = arith.constant 0 : index
    %c0_31 = arith.constant 0 : index
    %184 = vector.load %arg3[%c0_30, %c0_31] : memref<2x16xf32, #tpu.memory_space<vmem>>, vector<2x16xf32>
    tpu.vector_store %arg3[%c0_30, %c0_31], %183 {strides = array<i32>} : memref<2x16xf32, #tpu.memory_space<vmem>>, vector<2x16xf32>,
    %185 = vector.extract_strided_slice %183 {offsets = [0, 0], sizes = [2, 8], strides = [1, 1]} : vector<2x16xf32> to vector<2x8xf32>
    %186 = vector.extract_strided_slice %183 {offsets = [0, 8], sizes = [2, 8], strides = [1, 1]} : vector<2x16xf32> to vector<2x8xf32>
    %c328 = arith.constant 328 : index
    %c0_32 = arith.constant 0 : index
    %187 = vector.load %arg2[%c328, %c0_32] : memref<336x256xf32, #tpu.memory_space<vmem>>, vector<2x8xf32>
    %cst_33 = arith.constant 5.000000e-01 : f32
    %188 = vector.broadcast %cst_33 : f32 to vector<2x8xf32>
    %189 = arith.mulf %188, %186 : vector<2x8xf32>
    %190 = math.exp %189 : vector<2x8xf32>
    %191 = arith.mulf %187, %190 : vector<2x8xf32>
    %192 = arith.addf %185, %191 : vector<2x8xf32>
    %c136 = arith.constant 136 : index
    %c0_34 = arith.constant 0 : index
    %193 = vector.load %arg2[%c136, %c0_34] : memref<336x256xf32, #tpu.memory_space<vmem>>, vector<32x128xf32>
    %194 = arith.truncf %193 : vector<32x128xf32> to vector<32x128xbf16>
    %c168 = arith.constant 168 : index
    %c0_35 = arith.constant 0 : index
    %195 = vector.load %arg2[%c168, %c0_35] : memref<336x256xf32, #tpu.memory_space<vmem>>, vector<8x128xf32>
    %196 = arith.truncf %195 : vector<8x128xf32> to vector<8x128xbf16>
    %c176 = arith.constant 176 : index
    %c0_36 = arith.constant 0 : index
    %197 = vector.load %arg2[%c176, %c0_36] : memref<336x256xf32, #tpu.memory_space<vmem>>, vector<32x128xf32>
    %198 = arith.truncf %197 : vector<32x128xf32> to vector<32x128xbf16>
    %c208 = arith.constant 208 : index
    %c0_37 = arith.constant 0 : index
    %199 = vector.load %arg2[%c208, %c0_37] : memref<336x256xf32, #tpu.memory_space<vmem>>, vector<1x128xf32>
    %c0_38 = arith.constant 0 : index
    %c0_39 = arith.constant 0 : index
    %200 = vector.load %arg1[%c0_38, %c0_39] : memref<16x1xi32, #tpu.memory_space<vmem>>, vector<16x1xi32>
    %201 = tpu.iota {dimensions = array<i32: 1>} : vector<16x32xi32>
    %202 = vector.broadcast %200 : vector<16x1xi32> to vector<16x32xi32>
    %203 = arith.cmpi eq, %202, %201 : vector<16x32xi32>
    %cst_40 = arith.constant 1.000000e+00 : f32
    %cst_41 = arith.constant 0.000000e+00 : f32
    %204 = vector.broadcast %cst_40 : f32 to vector<16x32xf32>
    %205 = vector.broadcast %cst_41 : f32 to vector<16x32xf32>
    %206 = arith.select %203, %204, %205 : vector<16x32xi1>, vector<16x32xf32>
    %207 = arith.truncf %206 : vector<16x32xf32> to vector<16x32xbf16>
    %cst_42 = arith.constant dense<0.000000e+00> : vector<16x128xf32>
    %208 = tpu.matmul %207, %194, %cst_42 {dimension_numbers = #tpu.dot_dimension_numbers<[1], [0], [0], [1], [0, 0, 1, 1], [], []>} : vector<16x32xbf16>, vector<32x128xbf16>, vector<16x128xf32> -> vector<16x128xf32>
    %209 = arith.truncf %192 : vector<2x8xf32> to vector<2x8xbf16>
    %cst_43 = arith.constant dense<0.000000e+00> : vector<2x128xf32>
    %210 = tpu.matmul %209, %196, %cst_43 {dimension_numbers = #tpu.dot_dimension_numbers<[1], [0], [0], [1], [0, 0, 1, 1], [], []>} : vector<2x8xbf16>, vector<8x128xbf16>, vector<2x128xf32> -> vector<2x128xf32>
    %211 = vector.broadcast %199 : vector<1x128xf32> to vector<2x128xf32>
    %212 = arith.addf %210, %211 : vector<2x128xf32>
    %213 = tpu.concatenate %212, %212, %212, %212, %212, %212, %212, %212 in 0 : vector<2x128xf32>, vector<2x128xf32>, vector<2x128xf32>, vector<2x128xf32>, vector<2x128xf32>, vector<2x128xf32>, vector<2x128xf32>, vector<2x128xf32> -> vector<16x128xf32>
    %214 = arith.addf %208, %213 : vector<16x128xf32>
    %cst_44 = arith.constant 0.000000e+00 : f32
    %215 = vector.broadcast %cst_44 : f32 to vector<2x32xf32>
    %cst_45 = arith.constant 0.000000e+00 : f32
    %216 = vector.broadcast %cst_45 : f32 to vector<2x32xf32>
    %217 = vector.extract_strided_slice %214 {offsets = [0, 0], sizes = [2, 128], strides = [1, 1]} : vector<16x128xf32> to vector<2x128xf32>
    %218 = arith.truncf %215 : vector<2x32xf32> to vector<2x32xbf16>
    %cst_46 = arith.constant dense<0.000000e+00> : vector<2x128xf32>
    %219 = tpu.matmul %218, %198, %cst_46 {dimension_numbers = #tpu.dot_dimension_numbers<[1], [0], [0], [1], [0, 0, 1, 1], [], []>} : vector<2x32xbf16>, vector<32x128xbf16>, vector<2x128xf32> -> vector<2x128xf32>
    %220 = arith.addf %217, %219 : vector<2x128xf32>
    %221 = arith.negf %220 : vector<2x128xf32>
    %222 = math.exp %221 : vector<2x128xf32>
    %cst_47 = arith.constant 1.000000e+00 : f32
    %223 = vector.broadcast %cst_47 : f32 to vector<2x128xf32>
    %224 = arith.addf %223, %222 : vector<2x128xf32>
    %225 = arith.divf %223, %224 : vector<2x128xf32>
    %226 = math.tanh %220 : vector<2x128xf32>
    %227 = vector.extract_strided_slice %225 {offsets = [0, 0], sizes = [2, 32], strides = [1, 1]} : vector<2x128xf32> to vector<2x32xf32>
    %228 = vector.extract_strided_slice %225 {offsets = [0, 32], sizes = [2, 32], strides = [1, 1]} : vector<2x128xf32> to vector<2x32xf32>
    %229 = vector.extract_strided_slice %226 {offsets = [0, 64], sizes = [2, 32], strides = [1, 1]} : vector<2x128xf32> to vector<2x32xf32>
    %230 = vector.extract_strided_slice %225 {offsets = [0, 96], sizes = [2, 32], strides = [1, 1]} : vector<2x128xf32> to vector<2x32xf32>
    %231 = arith.mulf %228, %216 : vector<2x32xf32>
    %232 = arith.mulf %227, %229 : vector<2x32xf32>
    %233 = arith.addf %231, %232 : vector<2x32xf32>
    %234 = math.tanh %233 : vector<2x32xf32>
    %235 = arith.mulf %230, %234 : vector<2x32xf32>
    %236 = vector.extract_strided_slice %214 {offsets = [2, 0], sizes = [2, 128], strides = [1, 1]} : vector<16x128xf32> to vector<2x128xf32>
    %237 = arith.truncf %235 : vector<2x32xf32> to vector<2x32xbf16>
    %cst_48 = arith.constant dense<0.000000e+00> : vector<2x128xf32>
    %238 = tpu.matmul %237, %198, %cst_48 {dimension_numbers = #tpu.dot_dimension_numbers<[1], [0], [0], [1], [0, 0, 1, 1], [], []>} : vector<2x32xbf16>, vector<32x128xbf16>, vector<2x128xf32> -> vector<2x128xf32>
    %239 = arith.addf %236, %238 : vector<2x128xf32>
    %240 = arith.negf %239 : vector<2x128xf32>
    %241 = math.exp %240 : vector<2x128xf32>
    %cst_49 = arith.constant 1.000000e+00 : f32
    %242 = vector.broadcast %cst_49 : f32 to vector<2x128xf32>
    %243 = arith.addf %242, %241 : vector<2x128xf32>
    %244 = arith.divf %242, %243 : vector<2x128xf32>
    %245 = math.tanh %239 : vector<2x128xf32>
    %246 = vector.extract_strided_slice %244 {offsets = [0, 0], sizes = [2, 32], strides = [1, 1]} : vector<2x128xf32> to vector<2x32xf32>
    %247 = vector.extract_strided_slice %244 {offsets = [0, 32], sizes = [2, 32], strides = [1, 1]} : vector<2x128xf32> to vector<2x32xf32>
    %248 = vector.extract_strided_slice %245 {offsets = [0, 64], sizes = [2, 32], strides = [1, 1]} : vector<2x128xf32> to vector<2x32xf32>
    %249 = vector.extract_strided_slice %244 {offsets = [0, 96], sizes = [2, 32], strides = [1, 1]} : vector<2x128xf32> to vector<2x32xf32>
    %250 = arith.mulf %247, %233 : vector<2x32xf32>
    %251 = arith.mulf %246, %248 : vector<2x32xf32>
    %252 = arith.addf %250, %251 : vector<2x32xf32>
    %253 = math.tanh %252 : vector<2x32xf32>
    %254 = arith.mulf %249, %253 : vector<2x32xf32>
    %255 = vector.extract_strided_slice %214 {offsets = [4, 0], sizes = [2, 128], strides = [1, 1]} : vector<16x128xf32> to vector<2x128xf32>
    %256 = arith.truncf %254 : vector<2x32xf32> to vector<2x32xbf16>
    %cst_50 = arith.constant dense<0.000000e+00> : vector<2x128xf32>
    %257 = tpu.matmul %256, %198, %cst_50 {dimension_numbers = #tpu.dot_dimension_numbers<[1], [0], [0], [1], [0, 0, 1, 1], [], []>} : vector<2x32xbf16>, vector<32x128xbf16>, vector<2x128xf32> -> vector<2x128xf32>
    %258 = arith.addf %255, %257 : vector<2x128xf32>
    %259 = arith.negf %258 : vector<2x128xf32>
    %260 = math.exp %259 : vector<2x128xf32>
    %cst_51 = arith.constant 1.000000e+00 : f32
    %261 = vector.broadcast %cst_51 : f32 to vector<2x128xf32>
    %262 = arith.addf %261, %260 : vector<2x128xf32>
    %263 = arith.divf %261, %262 : vector<2x128xf32>
    %264 = math.tanh %258 : vector<2x128xf32>
    %265 = vector.extract_strided_slice %263 {offsets = [0, 0], sizes = [2, 32], strides = [1, 1]} : vector<2x128xf32> to vector<2x32xf32>
    %266 = vector.extract_strided_slice %263 {offsets = [0, 32], sizes = [2, 32], strides = [1, 1]} : vector<2x128xf32> to vector<2x32xf32>
    %267 = vector.extract_strided_slice %264 {offsets = [0, 64], sizes = [2, 32], strides = [1, 1]} : vector<2x128xf32> to vector<2x32xf32>
    %268 = vector.extract_strided_slice %263 {offsets = [0, 96], sizes = [2, 32], strides = [1, 1]} : vector<2x128xf32> to vector<2x32xf32>
    %269 = arith.mulf %266, %252 : vector<2x32xf32>
    %270 = arith.mulf %265, %267 : vector<2x32xf32>
    %271 = arith.addf %269, %270 : vector<2x32xf32>
    %272 = math.tanh %271 : vector<2x32xf32>
    %273 = arith.mulf %268, %272 : vector<2x32xf32>
    %274 = vector.extract_strided_slice %214 {offsets = [6, 0], sizes = [2, 128], strides = [1, 1]} : vector<16x128xf32> to vector<2x128xf32>
    %275 = arith.truncf %273 : vector<2x32xf32> to vector<2x32xbf16>
    %cst_52 = arith.constant dense<0.000000e+00> : vector<2x128xf32>
    %276 = tpu.matmul %275, %198, %cst_52 {dimension_numbers = #tpu.dot_dimension_numbers<[1], [0], [0], [1], [0, 0, 1, 1], [], []>} : vector<2x32xbf16>, vector<32x128xbf16>, vector<2x128xf32> -> vector<2x128xf32>
    %277 = arith.addf %274, %276 : vector<2x128xf32>
    %278 = arith.negf %277 : vector<2x128xf32>
    %279 = math.exp %278 : vector<2x128xf32>
    %cst_53 = arith.constant 1.000000e+00 : f32
    %280 = vector.broadcast %cst_53 : f32 to vector<2x128xf32>
    %281 = arith.addf %280, %279 : vector<2x128xf32>
    %282 = arith.divf %280, %281 : vector<2x128xf32>
    %283 = math.tanh %277 : vector<2x128xf32>
    %284 = vector.extract_strided_slice %282 {offsets = [0, 0], sizes = [2, 32], strides = [1, 1]} : vector<2x128xf32> to vector<2x32xf32>
    %285 = vector.extract_strided_slice %282 {offsets = [0, 32], sizes = [2, 32], strides = [1, 1]} : vector<2x128xf32> to vector<2x32xf32>
    %286 = vector.extract_strided_slice %283 {offsets = [0, 64], sizes = [2, 32], strides = [1, 1]} : vector<2x128xf32> to vector<2x32xf32>
    %287 = vector.extract_strided_slice %282 {offsets = [0, 96], sizes = [2, 32], strides = [1, 1]} : vector<2x128xf32> to vector<2x32xf32>
    %288 = arith.mulf %285, %271 : vector<2x32xf32>
    %289 = arith.mulf %284, %286 : vector<2x32xf32>
    %290 = arith.addf %288, %289 : vector<2x32xf32>
    %291 = math.tanh %290 : vector<2x32xf32>
    %292 = arith.mulf %287, %291 : vector<2x32xf32>
    %293 = vector.extract_strided_slice %214 {offsets = [8, 0], sizes = [2, 128], strides = [1, 1]} : vector<16x128xf32> to vector<2x128xf32>
    %294 = arith.truncf %292 : vector<2x32xf32> to vector<2x32xbf16>
    %cst_54 = arith.constant dense<0.000000e+00> : vector<2x128xf32>
    %295 = tpu.matmul %294, %198, %cst_54 {dimension_numbers = #tpu.dot_dimension_numbers<[1], [0], [0], [1], [0, 0, 1, 1], [], []>} : vector<2x32xbf16>, vector<32x128xbf16>, vector<2x128xf32> -> vector<2x128xf32>
    %296 = arith.addf %293, %295 : vector<2x128xf32>
    %297 = arith.negf %296 : vector<2x128xf32>
    %298 = math.exp %297 : vector<2x128xf32>
    %cst_55 = arith.constant 1.000000e+00 : f32
    %299 = vector.broadcast %cst_55 : f32 to vector<2x128xf32>
    %300 = arith.addf %299, %298 : vector<2x128xf32>
    %301 = arith.divf %299, %300 : vector<2x128xf32>
    %302 = math.tanh %296 : vector<2x128xf32>
    %303 = vector.extract_strided_slice %301 {offsets = [0, 0], sizes = [2, 32], strides = [1, 1]} : vector<2x128xf32> to vector<2x32xf32>
    %304 = vector.extract_strided_slice %301 {offsets = [0, 32], sizes = [2, 32], strides = [1, 1]} : vector<2x128xf32> to vector<2x32xf32>
    %305 = vector.extract_strided_slice %302 {offsets = [0, 64], sizes = [2, 32], strides = [1, 1]} : vector<2x128xf32> to vector<2x32xf32>
    %306 = vector.extract_strided_slice %301 {offsets = [0, 96], sizes = [2, 32], strides = [1, 1]} : vector<2x128xf32> to vector<2x32xf32>
    %307 = arith.mulf %304, %290 : vector<2x32xf32>
    %308 = arith.mulf %303, %305 : vector<2x32xf32>
    %309 = arith.addf %307, %308 : vector<2x32xf32>
    %310 = math.tanh %309 : vector<2x32xf32>
    %311 = arith.mulf %306, %310 : vector<2x32xf32>
    %312 = vector.extract_strided_slice %214 {offsets = [10, 0], sizes = [2, 128], strides = [1, 1]} : vector<16x128xf32> to vector<2x128xf32>
    %313 = arith.truncf %311 : vector<2x32xf32> to vector<2x32xbf16>
    %cst_56 = arith.constant dense<0.000000e+00> : vector<2x128xf32>
    %314 = tpu.matmul %313, %198, %cst_56 {dimension_numbers = #tpu.dot_dimension_numbers<[1], [0], [0], [1], [0, 0, 1, 1], [], []>} : vector<2x32xbf16>, vector<32x128xbf16>, vector<2x128xf32> -> vector<2x128xf32>
    %315 = arith.addf %312, %314 : vector<2x128xf32>
    %316 = arith.negf %315 : vector<2x128xf32>
    %317 = math.exp %316 : vector<2x128xf32>
    %cst_57 = arith.constant 1.000000e+00 : f32
    %318 = vector.broadcast %cst_57 : f32 to vector<2x128xf32>
    %319 = arith.addf %318, %317 : vector<2x128xf32>
    %320 = arith.divf %318, %319 : vector<2x128xf32>
    %321 = math.tanh %315 : vector<2x128xf32>
    %322 = vector.extract_strided_slice %320 {offsets = [0, 0], sizes = [2, 32], strides = [1, 1]} : vector<2x128xf32> to vector<2x32xf32>
    %323 = vector.extract_strided_slice %320 {offsets = [0, 32], sizes = [2, 32], strides = [1, 1]} : vector<2x128xf32> to vector<2x32xf32>
    %324 = vector.extract_strided_slice %321 {offsets = [0, 64], sizes = [2, 32], strides = [1, 1]} : vector<2x128xf32> to vector<2x32xf32>
    %325 = vector.extract_strided_slice %320 {offsets = [0, 96], sizes = [2, 32], strides = [1, 1]} : vector<2x128xf32> to vector<2x32xf32>
    %326 = arith.mulf %323, %309 : vector<2x32xf32>
    %327 = arith.mulf %322, %324 : vector<2x32xf32>
    %328 = arith.addf %326, %327 : vector<2x32xf32>
    %329 = math.tanh %328 : vector<2x32xf32>
    %330 = arith.mulf %325, %329 : vector<2x32xf32>
    %331 = vector.extract_strided_slice %214 {offsets = [12, 0], sizes = [2, 128], strides = [1, 1]} : vector<16x128xf32> to vector<2x128xf32>
    %332 = arith.truncf %330 : vector<2x32xf32> to vector<2x32xbf16>
    %cst_58 = arith.constant dense<0.000000e+00> : vector<2x128xf32>
    %333 = tpu.matmul %332, %198, %cst_58 {dimension_numbers = #tpu.dot_dimension_numbers<[1], [0], [0], [1], [0, 0, 1, 1], [], []>} : vector<2x32xbf16>, vector<32x128xbf16>, vector<2x128xf32> -> vector<2x128xf32>
    %334 = arith.addf %331, %333 : vector<2x128xf32>
    %335 = arith.negf %334 : vector<2x128xf32>
    %336 = math.exp %335 : vector<2x128xf32>
    %cst_59 = arith.constant 1.000000e+00 : f32
    %337 = vector.broadcast %cst_59 : f32 to vector<2x128xf32>
    %338 = arith.addf %337, %336 : vector<2x128xf32>
    %339 = arith.divf %337, %338 : vector<2x128xf32>
    %340 = math.tanh %334 : vector<2x128xf32>
    %341 = vector.extract_strided_slice %339 {offsets = [0, 0], sizes = [2, 32], strides = [1, 1]} : vector<2x128xf32> to vector<2x32xf32>
    %342 = vector.extract_strided_slice %339 {offsets = [0, 32], sizes = [2, 32], strides = [1, 1]} : vector<2x128xf32> to vector<2x32xf32>
    %343 = vector.extract_strided_slice %340 {offsets = [0, 64], sizes = [2, 32], strides = [1, 1]} : vector<2x128xf32> to vector<2x32xf32>
    %344 = vector.extract_strided_slice %339 {offsets = [0, 96], sizes = [2, 32], strides = [1, 1]} : vector<2x128xf32> to vector<2x32xf32>
    %345 = arith.mulf %342, %328 : vector<2x32xf32>
    %346 = arith.mulf %341, %343 : vector<2x32xf32>
    %347 = arith.addf %345, %346 : vector<2x32xf32>
    %348 = math.tanh %347 : vector<2x32xf32>
    %349 = arith.mulf %344, %348 : vector<2x32xf32>
    %350 = vector.extract_strided_slice %214 {offsets = [14, 0], sizes = [2, 128], strides = [1, 1]} : vector<16x128xf32> to vector<2x128xf32>
    %351 = arith.truncf %349 : vector<2x32xf32> to vector<2x32xbf16>
    %cst_60 = arith.constant dense<0.000000e+00> : vector<2x128xf32>
    %352 = tpu.matmul %351, %198, %cst_60 {dimension_numbers = #tpu.dot_dimension_numbers<[1], [0], [0], [1], [0, 0, 1, 1], [], []>} : vector<2x32xbf16>, vector<32x128xbf16>, vector<2x128xf32> -> vector<2x128xf32>
    %353 = arith.addf %350, %352 : vector<2x128xf32>
    %354 = arith.negf %353 : vector<2x128xf32>
    %355 = math.exp %354 : vector<2x128xf32>
    %cst_61 = arith.constant 1.000000e+00 : f32
    %356 = vector.broadcast %cst_61 : f32 to vector<2x128xf32>
    %357 = arith.addf %356, %355 : vector<2x128xf32>
    %358 = arith.divf %356, %357 : vector<2x128xf32>
    %359 = math.tanh %353 : vector<2x128xf32>
    %360 = vector.extract_strided_slice %358 {offsets = [0, 0], sizes = [2, 32], strides = [1, 1]} : vector<2x128xf32> to vector<2x32xf32>
    %361 = vector.extract_strided_slice %358 {offsets = [0, 32], sizes = [2, 32], strides = [1, 1]} : vector<2x128xf32> to vector<2x32xf32>
    %362 = vector.extract_strided_slice %359 {offsets = [0, 64], sizes = [2, 32], strides = [1, 1]} : vector<2x128xf32> to vector<2x32xf32>
    %363 = vector.extract_strided_slice %358 {offsets = [0, 96], sizes = [2, 32], strides = [1, 1]} : vector<2x128xf32> to vector<2x32xf32>
    %364 = arith.mulf %361, %347 : vector<2x32xf32>
    %365 = arith.mulf %360, %362 : vector<2x32xf32>
    %366 = arith.addf %364, %365 : vector<2x32xf32>
    %367 = math.tanh %366 : vector<2x32xf32>
    %368 = arith.mulf %363, %367 : vector<2x32xf32>
    %369 = tpu.concatenate %235, %254, %273, %292, %311, %330, %349, %368 in 0 : vector<2x32xf32>, vector<2x32xf32>, vector<2x32xf32>, vector<2x32xf32>, vector<2x32xf32>, vector<2x32xf32>, vector<2x32xf32>, vector<2x32xf32> -> vector<16x32xf32>
    %c288 = arith.constant 288 : index
    %c0_62 = arith.constant 0 : index
    %370 = vector.load %arg2[%c288, %c0_62] : memref<336x256xf32, #tpu.memory_space<vmem>>, vector<32x32xf32>
    %371 = arith.truncf %370 : vector<32x32xf32> to vector<32x32xbf16>
    %c320 = arith.constant 320 : index
    %c0_63 = arith.constant 0 : index
    %372 = vector.load %arg2[%c320, %c0_63] : memref<336x256xf32, #tpu.memory_space<vmem>>, vector<1x32xf32>
    %373 = arith.truncf %369 : vector<16x32xf32> to vector<16x32xbf16>
    %cst_64 = arith.constant dense<0.000000e+00> : vector<16x32xf32>
    %374 = tpu.matmul %373, %371, %cst_64 {dimension_numbers = #tpu.dot_dimension_numbers<[1], [0], [0], [1], [0, 0, 1, 1], [], []>} : vector<16x32xbf16>, vector<32x32xbf16>, vector<16x32xf32> -> vector<16x32xf32>
    %375 = vector.broadcast %372 : vector<1x32xf32> to vector<16x32xf32>
    %376 = arith.addf %374, %375 : vector<16x32xf32>
    %cst_65 = arith.constant dense<0xFF800000> : vector<16xf32>
    %377 = vector.multi_reduction <maximumf>, %376, %cst_65 [1] : vector<16x32xf32> to vector<16xf32>
    %378 = vector.shape_cast %377 : vector<16xf32> to vector<16x1xf32>
    %379 = vector.broadcast %378 : vector<16x1xf32> to vector<16x32xf32>
    %380 = arith.subf %376, %379 : vector<16x32xf32>
    %381 = math.exp %380 : vector<16x32xf32>
    %cst_66 = arith.constant dense<0.000000e+00> : vector<16xf32>
    %382 = vector.multi_reduction <add>, %381, %cst_66 [1] : vector<16x32xf32> to vector<16xf32>
    %383 = vector.shape_cast %382 : vector<16xf32> to vector<16x1xf32>
    %384 = math.log %383 : vector<16x1xf32>
    %385 = arith.addf %378, %384 : vector<16x1xf32>
    %386 = vector.broadcast %385 : vector<16x1xf32> to vector<16x32xf32>
    %387 = arith.subf %376, %386 : vector<16x32xf32>
    %c0_67 = arith.constant 0 : index
    %c0_68 = arith.constant 0 : index
    %388 = vector.load %arg4[%c0_67, %c0_68] : memref<16x32xf32, #tpu.memory_space<vmem>>, vector<16x32xf32>
    tpu.vector_store %arg4[%c0_67, %c0_68], %387 {strides = array<i32>} : memref<16x32xf32, #tpu.memory_space<vmem>>, vector<16x32xf32>,
    return
  }
}

</mosaic_0001>

<bundles_post_ra>
// kernel: vae_forward.1
= control target key start
LH: loop header
LB: loop body
LE: loop exit
PB: predicated region body
PF: predicated region fallthrough
CT: control target
= control target key end

     0   :  { %v2116_v0 = vmov 1   ;;  %v2117_v2 = vmov 0   ;;  %v19_v52 = vlaneseq  ;;  %v2118_v56 = vmov 0.0   ;;  %s2119_s28 = smov 32   ;;  %s2120_s5 = smov 64   ;;  %s2649_s0 = inlined_call_operand.vmem [shape: s32[16,2], index: 0, kind: input, shape index: {}]   ;;  %s2650_s2 = inlined_call_operand.vmem [shape: f32[336,256], index: 2, kind: input, shape index: {}]   ;;  %s2651_s1 = inlined_call_operand.vmem [shape: s32[16,1], index: 1, kind: input, shape index: {}]   ;;  %s2652_s3 = inlined_call_operand.vmem [shape: f32[2,16], index: 3, kind: output, shape index: {0}]   ;;  %s2653_s4 = inlined_call_operand.vmem [shape: f32[16,32], index: 4, kind: output, shape index: {1}]  }
   0x1   :  { %1943 = vset.pattern.permute.xlu0 %v2116_v0  ;;  %v17_v1 = vld [vmem:[%s2649_s0] sm:$0xff]  ;;  %1944 = vset.pattern.permute.xlu1 %v2117_v2  ;;  %v18_v3 = vld [vmem:[%s2649_s0 + $0x8] sm:$0xff]  ;;  %v77_v5 = vld [vmem:[%s2650_s2 + $0x98] sm:$0xff]  ;;  %vm46_vm4 = vcmask 261120   ;;  %vm111_vm5 = vcmask 523264   ;;  %vm2122_vm6 = vmmov 0  }
   0x2   :  { %33 = vperm.xlu0 %1943, %v17_v1   ;;  %22 = vperm.xlu1 %1944, %v17_v1   ;;  %v75_v4 = vld [vmem:[%s2650_s2 + $0x88] sm:$0xff]  ;;  %v53_v8 = vld [vmem:[%s2650_s2 + $0x18] sm:$0xff]  ;;  %v74_v9 = vld [vmem:[%s2650_s2 + $0x80] sm:$0xff]  ;;  %v2291_v53 = vand.u32 127, %v19_v52  ;;  %vm876_vm7 = vcmask 123904   ;;  %vm921_vm8 = vcmask 1043456  }
   0x3   :  { %192 = vmatprep.mubr.bf16.mxu1 %v2117_v2  ;;  %146 = vmatprep.mubr.bf16.mxu0 %v2117_v2  ;;  %v51_v6 = vld [vmem:[%s2650_s2 + $0x8] sm:$0xff]  ;;  %v2168_v7 = vpack.c.bf16 %v77_v5, %v75_v4  ;;  %v76_v10 = vld [vmem:[%s2650_s2 + $0x90] sm:$0xff]  ;;  %v50_v13 = vld [vmem:[%s2650_s2] sm:$0xff]  ;;  %s2123_s8 = smov 120   ;;  %vm917_vm9 = vcmask 64512   ;;  %vm972_vm12 = vcmask 1041408  }
   0x4   :  { %v67_v11 = vpack.c.bf16 %v53_v8, %v51_v6  ;;  %v2179_v12 = vpack.c.bf16 %v76_v10, %v74_v9  ;;  %v52_v14 = vld [vmem:[%s2650_s2 + $0x10] sm:$0xff]  ;;  %v79_v15 = vld [vmem:[%s2650_s2 + $0xa8] sm:$0xff]  ;;  %v81_v17 = vld [vmem:[%s2650_s2 + $0xb8] sm:$0xff]  ;;  %v102_v9 = vshrl.u32 %v19_v52, 7  ;;  %vm975_vm13 = vcmask 1045504  }
   0x5   :  { %160 = vmatprep.subr.bf16.mxu1 %v2168_v7  ;;  %v66_v16 = vpack.c.bf16 %v52_v14, %v50_v13  ;;  %v55_v18 = vld [vmem:[%s2650_s2 + $0x28] sm:$0xff]  ;;  %v57_v19 = vld [vmem:[%s2650_s2 + $0x38] sm:$0xff]  ;;  %v2201_v20 = vpack.c.bf16 %v81_v17, %v79_v15  ;;  %v78_v22 = vld [vmem:[%s2650_s2 + $0xa0] sm:$0xff] }
   0x6   :  { %36 = vperm.xlu0 %1943, %v18_v3   ;;  %25 = vperm.xlu1 %1944, %v18_v3   ;;  %v69_v21 = vpack.c.bf16 %v57_v19, %v55_v18  ;;  %v80_v23 = vld [vmem:[%s2650_s2 + $0xb0] sm:$0xff]  ;;  %v54_v24 = vld [vmem:[%s2650_s2 + $0x20] sm:$0xff]  ;;  %v83_v27 = vld [vmem:[%s2650_s2 + $0xc8] sm:$0xff]  ;;  %v103_v10 = vsub.s32 0, %v102_v9  ;;  %v107_v14 = vsub.s32 1, %v102_v9 }
   0x7   :  { %114 = vmatprep.subr.bf16.mxu0 %v67_v11  ;;  %161 = vmatpush1.bf16.msra.mxu1 %v2179_v12  ;;  %v2212_v25 = vpack.c.bf16 %v80_v23, %v78_v22  ;;  %v56_v26 = vld [vmem:[%s2650_s2 + $0x30] sm:$0xff]  ;;  %v85_v28 = vld [vmem:[%s2650_s2 + $0xd8] sm:$0xff]  ;;  %v59_v31 = vld [vmem:[%s2650_s2 + $0x48] sm:$0xff] }
   0x8   :  { %115 = vmatpush1.bf16.msra.mxu0 %v66_v16  ;;  %162 = vmatprep.subr.bf16.mxu1 %v2201_v20  ;;  %v68_v29 = vpack.c.bf16 %v56_v26, %v54_v24  ;;  %v2224_v30 = vpack.c.bf16 %v85_v28, %v83_v27  ;;  %v61_v32 = vld [vmem:[%s2650_s2 + $0x58] sm:$0xff]  ;;  %v82_v33 = vld [vmem:[%s2650_s2 + $0xc0] sm:$0xff]  ;;  %v84_v35 = vld [vmem:[%s2650_s2 + $0xd0] sm:$0xff] }
   0x9   :  { %116 = vmatprep.subr.bf16.mxu0 %v69_v21  ;;  %v71_v34 = vpack.c.bf16 %v61_v32, %v59_v31  ;;  %v58_v36 = vld [vmem:[%s2650_s2 + $0x40] sm:$0xff]  ;;  %v60_v37 = vld [vmem:[%s2650_s2 + $0x50] sm:$0xff]  ;;  %v2245_v38 = vpack.c.bf16 %v84_v35, %v82_v33  ;;  %v87_v39 = vld [vmem:[%s2650_s2 + $0xe8] sm:$0xff] }
   0xa   :  { %1945 = vset.pattern.permute.xlu0 %v2117_v2  ;;  %v89_v40 = vld [vmem:[%s2650_s2 + $0xf8] sm:$0xff]  ;;  %v63_v41 = vld [vmem:[%s2650_s2 + $0x68] sm:$0xff]  ;;  %v70_v42 = vpack.c.bf16 %v60_v37, %v58_v36  ;;  %v86_v45 = vld [vmem:[%s2650_s2 + $0xe0] sm:$0xff] }
   0xb   :  { %163 = vmatpush1.bf16.msra.mxu1 %v2212_v25  ;;  %v2257_v43 = vpack.c.bf16 %v89_v40, %v87_v39  ;;  %v65_v44 = vld [vmem:[%s2650_s2 + $0x78] sm:$0xff]  ;;  %v88_v46 = vld [vmem:[%s2650_s2 + $0xf0] sm:$0xff]  ;;  %v62_v48 = vld [vmem:[%s2650_s2 + $0x60] sm:$0xff] }
   0xc   :  { %117 = vmatpush1.bf16.msra.mxu0 %v68_v29  ;;  %164 = vmatprep.subr.bf16.mxu1 %v2224_v30  ;;  %v73_v47 = vpack.c.bf16 %v65_v44, %v63_v41  ;;  %v64_v49 = vld [vmem:[%s2650_s2 + $0x70] sm:$0xff]  ;;  %v2275_v50 = vpack.c.bf16 %v88_v46, %v86_v45  ;;  %v1733_v11 = vld [vmem:[%s2650_s2 + $0x100] ss:$8 sm:$0x3] }
   0xd   :  { %118 = vmatprep.subr.bf16.mxu0 %v71_v34  ;;  %v72_v51 = vpack.c.bf16 %v64_v49, %v62_v48  ;;  %v104_v13 = vrot.slane %v1733_v11, %v103_v10  ;;  %v108_v18 = vrot.slane %v1733_v11, %v107_v14 }
   0xf   :  { %165 = vmatpush1.bf16.msra.mxu1 %v2245_v38 }
  0x10   :  { %119 = vmatpush1.bf16.msra.mxu0 %v70_v42  ;;  %166 = vmatprep.subr.bf16.mxu1 %v2257_v43 }
  0x11   :  { %120 = vmatprep.subr.bf16.mxu0 %v73_v47 }
  0x13   :  { %167 = vmatpush1.bf16.msra.mxu1 %v2275_v50 }
  0x14   :  { %121 = vmatpush1.bf16.msra.mxu0 %v72_v51  ;;  %314 = vmatprep.subr.bf16.mxu1 %v2168_v7 }
  0x15   :  { %232 = vmatprep.subr.bf16.mxu0 %v2168_v7 }
  0x16   :  { %193 = vmatmul.mubr.bf16.vlgmr.msra.gmra.mrb[0].mxu1 %v2117_v2 }
  0x17   :  { %315 = vmatpush1.bf16.msra.mxu1 %v2179_v12  ;;  %346 = vmatprep.mubr.bf16.mxu1 %v2117_v2 }
  0x18   :  { %316 = vmatprep.subr.bf16.mxu1 %v2201_v20 }
  0x1b   :  { %317 = vmatpush1.bf16.msra.mxu1 %v2212_v25 }
  0x1c   :  { %318 = vmatprep.subr.bf16.mxu1 %v2224_v30 }
  0x1f   :  { %319 = vmatpush1.bf16.msra.mxu1 %v2245_v38 }
  0x20   :  { %320 = vmatprep.subr.bf16.mxu1 %v2257_v43 }
  0x23   :  { %321 = vmatpush1.bf16.msra.mxu1 %v2275_v50 }
  0x24   :  { %478 = vmatprep.subr.bf16.mxu1 %v2168_v7 }
  0x81   :  { %v34_v54 = vpop.permute.xlu0 %33  ;;  %v23_v60 = vpop.permute.xlu1 %22 }
  0x82   :  { %vm38_vm0 = vcmp.eq.s32.totalorder %v34_v54, %v2291_v53  ;;  %vm27_vm2 = vcmp.eq.s32.totalorder %v23_v60, %v2291_v53 }
  0x83   :  { %v40_v57 = vsel %vm38_vm0, 1.0, %v2118_v56  ;;  %v29_v63 = vsel %vm27_vm2, 1.0, %v2118_v56 }
  0x85   :  { %v37_v55 = vpop.permute.xlu0 %36  ;;  %v26_v62 = vpop.permute.xlu1 %25 }
  0x86   :  { %vm39_vm1 = vcmp.eq.s32.totalorder %v37_v55, %v2291_v53  ;;  %vm28_vm3 = vcmp.eq.s32.totalorder %v26_v62, %v2291_v53 }
  0x87   :  { %v41_v58 = vsel %vm39_vm1, 1.0, %v2118_v56  ;;  %v30_v0 = vsel %vm28_vm3, 1.0, %v2118_v56 }
  0x88   :  { %v42_v59 = vpack.c.bf16 %v41_v58, %v40_v57  ;;  %v31_v1 = vpack.c.bf16 %v30_v0, %v29_v63 }
  0x8a   :  { %44 = vrot.lane.b32.xlu0 %v42_v59, %s2119_s28 }
  0xe9   :  { %v194_v61 = vpop.f32.mrb[0].mxu1 }
  0xea   :  { %v196_v5 = vpop.f32.mrb[1].mxu1 }
  0xeb   :  { %v198_v6 = vpop.f32.mrb[2].mxu1 }
  0xec   :  { %v199_v8 = vpop.f32.mrb[3].mxu1 }
  0xfc   :  { %v45_v3 = vpop.permute.xlu0 %44 }
  0xfd   :  { %v49_v4 = vsel %vm46_vm4, %v31_v1, %v45_v3 }
  0xfe   :  { %1734 = vmatmul.mubr.msk.bf16.vlgmr.msra.gmra.mrb[0].mxu0 %vm111_vm5, %v49_v4 }
  0xff   :  { %233 = vmatpush1.bf16.msra.mxu0 %v2179_v12  ;;  %264 = vmatprep.mubr.bf16.mxu0 %v2117_v2 }
 0x100   :  { %234 = vmatprep.subr.bf16.mxu0 %v2201_v20 }
 0x103   :  { %235 = vmatpush1.bf16.msra.mxu0 %v2212_v25 }
 0x104   :  { %236 = vmatprep.subr.bf16.mxu0 %v2224_v30 }
 0x107   :  { %237 = vmatpush1.bf16.msra.mxu0 %v2245_v38 }
 0x108   :  { %238 = vmatprep.subr.bf16.mxu0 %v2257_v43 }
 0x10b   :  { %239 = vmatpush1.bf16.msra.mxu0 %v2275_v50 }
 0x10c   :  { %396 = vmatprep.subr.bf16.mxu0 %v2168_v7 }
 0x1d1   :  { %v148_v15 = vpop.f32.mrb[0].mxu0 }
 0x1d2   :  { %v2316_v16 = vadd.f32 %v148_v15, %v104_v13  ;;  %v150_v17 = vpop.f32.mrb[1].mxu0 }
 0x1d3   :  { %v152_v19 = vpop.f32.mrb[2].mxu0  ;;  %v2323_v27 = vadd.f32 %v150_v17, %v108_v18 }
 0x1d4   :  { %v201_v21 = vadd.f32 %v194_v61, %v2316_v16  ;;  %v2319_v22 = vadd.f32 %v152_v19, %v104_v13  ;;  %v154_v23 = vpop.f32.mrb[3].mxu0 }
 0x1d5   :  { %v2321_v24 = vadd.f32 %v154_v23, %v108_v18  ;;  %v202_v28 = vadd.f32 %v196_v5, %v2323_v27 }
 0x1d6   :  { %v1735_v26 = vmul.f32 -1.442695, %v201_v21 }
 0x1d7   :  { %v1736_v35 = vmul.f32 -1.442695, %v202_v28 }
 0x1d8   :  { %1946 = vpow2.f32 %v1735_v26 }
 0x1d9   :  { %1948 = vtanh.f32 %v202_v28 }
 0x1e2   :  { %v1947_v29 = vpop.eup %1946 }
 0x1e3   :  { %v209_v31 = vadd.f32 1.0, %v1947_v29  ;;  %v1949_v32 = vpop.eup %1948 }
 0x1e5   :  { %1950 = vrcp.f32 %v209_v31 }
 0x1e6   :  { %1952 = vpow2.f32 %v1736_v35 }
 0x1ef   :  { %v1951_v33 = vpop.eup %1950 }
 0x1f0   :  { %v217_v34 = vmul.f32 %v1951_v33, %v1949_v32  ;;  %v1953_v36 = vpop.eup %1952  ;;  %v216_v39 = vmul.f32 0.0, %v1951_v33 }
 0x1f1   :  { %v210_v37 = vadd.f32 1.0, %v1953_v36 }
 0x1f2   :  { %219 = vrot.lane.b32.xlu1 %v217_v34, %s2120_s5 }
 0x1f3   :  { %1954 = vrcp.f32 %v210_v37 }
 0x1fd   :  { %v1955_v42 = vpop.eup %1954 }
 0x264   :  { %v220_v40 = vpop.permute.xlu1 %219 }
 0x265   :  { %v222_v41 = vadd.f32 %v220_v40, %v216_v39 }
 0x267   :  { %1956 = vtanh.f32 %v222_v41  ;;  %v295_v63 = vrot.slane %v222_v41, 6 }
 0x271   :  { %v1957_v44 = vpop.eup %1956 }
 0x272   :  { %v224_v45 = vmul.f32 %v1957_v44, %v1955_v42 }
 0x274   :  { %v225_v46 = vpack.c.bf16 %v224_v45, %v224_v45 }
 0x276   :  { %227 = vrot.lane.b32.xlu0 %v225_v46, %s2120_s5 }
 0x2e8   :  { %v228_v47 = vpop.permute.xlu0 %227 }
 0x2e9   :  { %1737 = vmatmul.mubr.msk.bf16.vlgmr.msra.gmra.mrb[4].mxu0 %vm111_vm5, %v228_v47 }
 0x2ea   :  { %397 = vmatpush1.bf16.msra.mxu0 %v2179_v12  ;;  %428 = vmatprep.mubr.bf16.mxu0 %v2117_v2 }
 0x2eb   :  { %398 = vmatprep.subr.bf16.mxu0 %v2201_v20 }
 0x2ee   :  { %399 = vmatpush1.bf16.msra.mxu0 %v2212_v25 }
 0x2ef   :  { %400 = vmatprep.subr.bf16.mxu0 %v2224_v30 }
 0x2f2   :  { %401 = vmatpush1.bf16.msra.mxu0 %v2245_v38 }
 0x2f3   :  { %402 = vmatprep.subr.bf16.mxu0 %v2257_v43 }
 0x2f6   :  { %403 = vmatpush1.bf16.msra.mxu0 %v2275_v50 }
 0x2f7   :  { %553 = vmatprep.subr.bf16.mxu0 %v2168_v7 }
 0x3bc   :  { %v266_v48 = vpop.f32.mrb[4].mxu0 }
 0x3bd   :  { %v275_v49 = vrot.slane %v266_v48, 6  ;;  %v268_v51 = vpop.f32.mrb[5].mxu0 }
 0x3be   :  { %v270_v52 = vpop.f32.mrb[6].mxu0  ;;  %v276_v58 = vrot.slane %v268_v51, 6 }
 0x3bf   :  { %v279_v54 = vadd.f32 %v275_v49, %v2316_v16  ;;  %v271_v55 = vpop.f32.mrb[7].mxu0 }
 0x3c0   :  { %v280_v59 = vadd.f32 %v276_v58, %v2323_v27 }
 0x3c1   :  { %v1738_v57 = vmul.f32 -1.442695, %v279_v54 }
 0x3c2   :  { %v1739_v4 = vmul.f32 -1.442695, %v280_v59 }
 0x3c3   :  { %1958 = vpow2.f32 %v1738_v57 }
 0x3c4   :  { %1960 = vtanh.f32 %v280_v59 }
 0x3cd   :  { %v1959_v60 = vpop.eup %1958 }
 0x3ce   :  { %v287_v61 = vadd.f32 1.0, %v1959_v60  ;;  %v1961_v62 = vpop.eup %1960 }
 0x3d0   :  { %1962 = vrcp.f32 %v287_v61 }
 0x3d1   :  { %1964 = vpow2.f32 %v1739_v4 }
 0x3da   :  { %v1963_v0 = vpop.eup %1962 }
 0x3db   :  { %v298_v1 = vmul.f32 %v1963_v0, %v1961_v62  ;;  %v297_v3 = vmul.f32 %v1963_v0, %v295_v63  ;;  %v1965_v5 = vpop.eup %1964 }
 0x3dc   :  { %v288_v6 = vadd.f32 1.0, %v1965_v5 }
 0x3dd   :  { %300 = vrot.lane.b32.xlu1 %v298_v1, %s2120_s5 }
 0x3de   :  { %1966 = vrcp.f32 %v288_v6 }
 0x3e8   :  { %v1967_v10 = vpop.eup %1966 }
 0x44f   :  { %v301_v8 = vpop.permute.xlu1 %300 }
 0x450   :  { %v303_v9 = vadd.f32 %v301_v8, %v297_v3 }
 0x452   :  { %1968 = vtanh.f32 %v303_v9  ;;  %v377_v36 = vrot.slane %v303_v9, 6 }
 0x45c   :  { %v1969_v11 = vpop.eup %1968 }
 0x45d   :  { %v305_v13 = vmul.f32 %v1969_v11, %v1967_v10 }
 0x45f   :  { %v306_v14 = vpack.c.bf16 %v305_v13, %v305_v13 }
 0x461   :  { %v308_v15 = vrot.slane %v306_v14, 1 }
 0x463   :  { %309 = vrot.lane.b32.xlu0 %v308_v15, %s2120_s5 }
 0x4d5   :  { %v310_v17 = vpop.permute.xlu0 %309 }
 0x4d6   :  { %1740 = vmatmul.mubr.msk.bf16.vlgmr.msra.gmra.mrb[4].mxu1 %vm111_vm5, %v310_v17 }
 0x4d7   :  { %479 = vmatpush1.bf16.msra.mxu1 %v2179_v12  ;;  %510 = vmatprep.mubr.bf16.mxu1 %v2117_v2 }
 0x4d8   :  { %480 = vmatprep.subr.bf16.mxu1 %v2201_v20 }
 0x4db   :  { %481 = vmatpush1.bf16.msra.mxu1 %v2212_v25 }
 0x4dc   :  { %482 = vmatprep.subr.bf16.mxu1 %v2224_v30 }
 0x4df   :  { %483 = vmatpush1.bf16.msra.mxu1 %v2245_v38 }
 0x4e0   :  { %484 = vmatprep.subr.bf16.mxu1 %v2257_v43 }
 0x4e3   :  { %485 = vmatpush1.bf16.msra.mxu1 %v2275_v50 }
 0x4e4   :  { %635 = vmatprep.subr.bf16.mxu1 %v2168_v7 }
 0x5a9   :  { %v348_v18 = vpop.f32.mrb[4].mxu1 }
 0x5aa   :  { %v357_v19 = vrot.slane %v348_v18, 4  ;;  %v350_v21 = vpop.f32.mrb[5].mxu1 }
 0x5ab   :  { %v352_v23 = vpop.f32.mrb[6].mxu1  ;;  %v358_v31 = vrot.slane %v350_v21, 4 }
 0x5ac   :  { %v361_v26 = vadd.f32 %v357_v19, %v2316_v16  ;;  %v353_v28 = vpop.f32.mrb[7].mxu1 }
 0x5ad   :  { %v362_v32 = vadd.f32 %v358_v31, %v2323_v27 }
 0x5ae   :  { %v1741_v29 = vmul.f32 -1.442695, %v361_v26 }
 0x5af   :  { %v1742_v41 = vmul.f32 -1.442695, %v362_v32 }
 0x5b0   :  { %1970 = vpow2.f32 %v1741_v29 }
 0x5b1   :  { %1972 = vtanh.f32 %v362_v32 }
 0x5ba   :  { %v1971_v33 = vpop.eup %1970 }
 0x5bb   :  { %v369_v34 = vadd.f32 1.0, %v1971_v33  ;;  %v1973_v35 = vpop.eup %1972 }
 0x5bd   :  { %1974 = vrcp.f32 %v369_v34 }
 0x5be   :  { %1976 = vpow2.f32 %v1742_v41 }
 0x5c7   :  { %v1975_v37 = vpop.eup %1974 }
 0x5c8   :  { %v380_v39 = vmul.f32 %v1975_v37, %v1973_v35  ;;  %v379_v40 = vmul.f32 %v1975_v37, %v377_v36  ;;  %v1977_v42 = vpop.eup %1976 }
 0x5c9   :  { %v370_v44 = vadd.f32 1.0, %v1977_v42 }
 0x5ca   :  { %382 = vrot.lane.b32.xlu1 %v380_v39, %s2120_s5 }
 0x5cb   :  { %1978 = vrcp.f32 %v370_v44 }
 0x5d5   :  { %v1979_v47 = vpop.eup %1978 }
 0x63c   :  { %v383_v45 = vpop.permute.xlu1 %382 }
 0x63d   :  { %v385_v46 = vadd.f32 %v383_v45, %v379_v40 }
 0x63f   :  { %1980 = vtanh.f32 %v385_v46  ;;  %v459_v5 = vrot.slane %v385_v46, 6 }
 0x649   :  { %v1981_v48 = vpop.eup %1980 }
 0x64a   :  { %v387_v49 = vmul.f32 %v1981_v48, %v1979_v47 }
 0x64c   :  { %v388_v51 = vpack.c.bf16 %v387_v49, %v387_v49 }
 0x64e   :  { %v390_v52 = vrot.slane %v388_v51, 2 }
 0x650   :  { %391 = vrot.lane.b32.xlu0 %v390_v52, %s2120_s5 }
 0x6c2   :  { %v392_v54 = vpop.permute.xlu0 %391 }
 0x6c3   :  { %1743 = vmatmul.mubr.msk.bf16.vlgmr.msra.gmra.mrb[8].mxu0 %vm111_vm5, %v392_v54 }
 0x6c4   :  { %554 = vmatpush1.bf16.msra.mxu0 %v2179_v12  ;;  %585 = vmatprep.mubr.bf16.mxu0 %v2117_v2 }
 0x6c5   :  { %555 = vmatprep.subr.bf16.mxu0 %v2201_v20 }
 0x6c8   :  { %556 = vmatpush1.bf16.msra.mxu0 %v2212_v25 }
 0x6c9   :  { %557 = vmatprep.subr.bf16.mxu0 %v2224_v30 }
 0x6cc   :  { %558 = vmatpush1.bf16.msra.mxu0 %v2245_v38 }
 0x6cd   :  { %559 = vmatprep.subr.bf16.mxu0 %v2257_v43 }
 0x6d0   :  { %560 = vmatpush1.bf16.msra.mxu0 %v2275_v50 }
 0x6d1   :  { %717 = vmatprep.subr.bf16.mxu0 %v2168_v7 }
 0x796   :  { %v430_v55 = vpop.f32.mrb[8].mxu0 }
 0x797   :  { %v439_v57 = vrot.slane %v430_v55, 2  ;;  %v432_v58 = vpop.f32.mrb[9].mxu0 }
 0x798   :  { %v434_v59 = vpop.f32.mrb[10].mxu0  ;;  %v440_v63 = vrot.slane %v432_v58, 2 }
 0x799   :  { %v443_v60 = vadd.f32 %v439_v57, %v2316_v16  ;;  %v435_v61 = vpop.f32.mrb[11].mxu0 }
 0x79a   :  { %v444_v0 = vadd.f32 %v440_v63, %v2323_v27 }
 0x79b   :  { %v1744_v62 = vmul.f32 -1.442695, %v443_v60 }
 0x79c   :  { %v1745_v9 = vmul.f32 -1.442695, %v444_v0 }
 0x79d   :  { %1982 = vpow2.f32 %v1744_v62 }
 0x79e   :  { %1984 = vtanh.f32 %v444_v0 }
 0x7a7   :  { %v1983_v1 = vpop.eup %1982 }
 0x7a8   :  { %v451_v3 = vadd.f32 1.0, %v1983_v1  ;;  %v1985_v4 = vpop.eup %1984 }
 0x7aa   :  { %1986 = vrcp.f32 %v451_v3 }
 0x7ab   :  { %1988 = vpow2.f32 %v1745_v9 }
 0x7b4   :  { %v1987_v6 = vpop.eup %1986 }
 0x7b5   :  { %v462_v7 = vmul.f32 %v1987_v6, %v1985_v4  ;;  %v461_v8 = vmul.f32 %v1987_v6, %v459_v5  ;;  %v1989_v16 = vpop.eup %1988 }
 0x7b6   :  { %v452_v10 = vadd.f32 1.0, %v1989_v16 }
 0x7b7   :  { %464 = vrot.lane.b32.xlu1 %v462_v7, %s2120_s5 }
 0x7b8   :  { %1990 = vrcp.f32 %v452_v10 }
 0x7c2   :  { %v1991_v27 = vpop.eup %1990 }
 0x829   :  { %v465_v11 = vpop.permute.xlu1 %464 }
 0x82a   :  { %v467_v13 = vadd.f32 %v465_v11, %v461_v8 }
 0x82c   :  { %1992 = vtanh.f32 %v467_v13  ;;  %v535_v36 = vrot.slane %v467_v13, 6 }
 0x836   :  { %v1993_v14 = vpop.eup %1992 }
 0x837   :  { %v469_v15 = vmul.f32 %v1993_v14, %v1991_v27 }
 0x839   :  { %v470_v17 = vpack.c.bf16 %v469_v15, %v469_v15 }
 0x83b   :  { %v472_v18 = vrot.slane %v470_v17, 3 }
 0x83d   :  { %473 = vrot.lane.b32.xlu0 %v472_v18, %s2120_s5 }
 0x8af   :  { %v474_v19 = vpop.permute.xlu0 %473 }
 0x8b0   :  { %1746 = vmatmul.mubr.msk.bf16.vlgmr.msra.gmra.mrb[8].mxu1 %vm111_vm5, %v474_v19 }
 0x8b1   :  { %636 = vmatpush1.bf16.msra.mxu1 %v2179_v12  ;;  %667 = vmatprep.mubr.bf16.mxu1 %v2117_v2 }
 0x8b2   :  { %637 = vmatprep.subr.bf16.mxu1 %v2201_v20 }
 0x8b5   :  { %638 = vmatpush1.bf16.msra.mxu1 %v2212_v25 }
 0x8b6   :  { %639 = vmatprep.subr.bf16.mxu1 %v2224_v30 }
 0x8b9   :  { %640 = vmatpush1.bf16.msra.mxu1 %v2245_v38 }
 0x8ba   :  { %641 = vmatprep.subr.bf16.mxu1 %v2257_v43 }
 0x8bd   :  { %642 = vmatpush1.bf16.msra.mxu1 %v2275_v50 }
 0x983   :  { %v512_v21 = vpop.f32.mrb[8].mxu1 }
 0x984   :  { %v519_v23 = vadd.f32 %v512_v21, %v2319_v22  ;;  %v514_v26 = vpop.f32.mrb[9].mxu1 }
 0x985   :  { %v516_v28 = vpop.f32.mrb[10].mxu1  ;;  %v520_v32 = vadd.f32 %v514_v26, %v2321_v24 }
 0x986   :  { %v1747_v29 = vmul.f32 -1.442695, %v519_v23  ;;  %v517_v31 = vpop.f32.mrb[11].mxu1 }
 0x987   :  { %v1748_v41 = vmul.f32 -1.442695, %v520_v32 }
 0x988   :  { %1994 = vpow2.f32 %v1747_v29 }
 0x989   :  { %1996 = vtanh.f32 %v520_v32 }
 0x992   :  { %v1995_v33 = vpop.eup %1994 }
 0x993   :  { %v527_v34 = vadd.f32 1.0, %v1995_v33  ;;  %v1997_v35 = vpop.eup %1996 }
 0x995   :  { %1998 = vrcp.f32 %v527_v34 }
 0x996   :  { %2000 = vpow2.f32 %v1748_v41 }
 0x99f   :  { %v1999_v37 = vpop.eup %1998 }
 0x9a0   :  { %v538_v39 = vmul.f32 %v1999_v37, %v1997_v35  ;;  %v537_v40 = vmul.f32 %v1999_v37, %v535_v36  ;;  %v2001_v42 = vpop.eup %2000 }
 0x9a1   :  { %v528_v44 = vadd.f32 1.0, %v2001_v42 }
 0x9a2   :  { %540 = vrot.lane.b32.xlu1 %v538_v39, %s2120_s5 }
 0x9a3   :  { %2002 = vrcp.f32 %v528_v44 }
 0x9ad   :  { %v2003_v47 = vpop.eup %2002 }
 0xa14   :  { %v541_v45 = vpop.permute.xlu1 %540 }
 0xa15   :  { %v543_v46 = vadd.f32 %v541_v45, %v537_v40 }
 0xa17   :  { %2004 = vtanh.f32 %v543_v46 }
 0xa21   :  { %v2005_v48 = vpop.eup %2004 }
 0xa22   :  { %v545_v49 = vmul.f32 %v2005_v48, %v2003_v47 }
 0xa24   :  { %v546_v51 = vpack.c.bf16 %v545_v49, %v545_v49 }
 0xa26   :  { %548 = vrot.lane.b32.xlu0 %v546_v51, %s2120_s5 }
 0xa98   :  { %v549_v52 = vpop.permute.xlu0 %548 }
 0xa99   :  { %1749 = vmatmul.mubr.msk.bf16.vlgmr.msra.gmra.mrb[12].mxu0 %vm111_vm5, %v549_v52 }
 0xa9a   :  { %718 = vmatpush1.bf16.msra.mxu0 %v2179_v12  ;;  %749 = vmatprep.mubr.bf16.mxu0 %v2117_v2 }
 0xa9b   :  { %719 = vmatprep.subr.bf16.mxu0 %v2201_v20 }
 0xa9e   :  { %720 = vmatpush1.bf16.msra.mxu0 %v2212_v25 }
 0xa9f   :  { %721 = vmatprep.subr.bf16.mxu0 %v2224_v30 }
 0xaa2   :  { %722 = vmatpush1.bf16.msra.mxu0 %v2245_v38 }
 0xaa3   :  { %723 = vmatprep.subr.bf16.mxu0 %v2257_v43 }
 0xaa6   :  { %724 = vmatpush1.bf16.msra.mxu0 %v2275_v50  ;;  %v616_v50 = vrot.slane %v543_v46, 6 }
 0xaa7   :  { %1843 = vmatprep.subr.bf16.mxu0 %v2118_v56 }
 0xb6c   :  { %v587_v54 = vpop.f32.mrb[12].mxu0 }
 0xb6d   :  { %v596_v55 = vrot.slane %v587_v54, 6  ;;  %v589_v57 = vpop.f32.mrb[13].mxu0 }
 0xb6e   :  { %v591_v12 = vpop.f32.mrb[14].mxu0  ;;  %v597_v25 = vrot.slane %v589_v57, 6 }
 0xb6f   :  { %v600_v58 = vadd.f32 %v596_v55, %v2319_v22  ;;  %v592_v59 = vpop.f32.mrb[15].mxu0 }
 0xb70   :  { %v601_v30 = vadd.f32 %v597_v25, %v2321_v24 }
 0xb71   :  { %v1750_v20 = vmul.f32 -1.442695, %v600_v58 }
 0xb72   :  { %v1751_v0 = vmul.f32 -1.442695, %v601_v30 }
 0xb73   :  { %2006 = vpow2.f32 %v1750_v20 }
 0xb74   :  { %2008 = vtanh.f32 %v601_v30 }
 0xb7d   :  { %v2007_v60 = vpop.eup %2006 }
 0xb7e   :  { %v608_v38 = vadd.f32 1.0, %v2007_v60  ;;  %v2009_v43 = vpop.eup %2008 }
 0xb80   :  { %2010 = vrcp.f32 %v608_v38 }
 0xb81   :  { %2012 = vpow2.f32 %v1751_v0  ;;  %v795_v0 = vld [vmem:[%s2650_s2 + $0x1f0] sm:$0xff] }
 0xb8a   :  { %v2011_v61 = vpop.eup %2010 }
 0xb8b   :  { %v619_v62 = vmul.f32 %v2011_v61, %v2009_v43  ;;  %v618_v63 = vmul.f32 %v2011_v61, %v616_v50  ;;  %v2013_v1 = vpop.eup %2012  ;;  %v792_v43 = vld [vmem:[%s2650_s2 + $0x1c0] sm:$0xff]  ;;  %v2121_v50 = vmov 0.0|0.0  }
 0xb8c   :  { %v609_v3 = vadd.f32 1.0, %v2013_v1  ;;  %1923 = vmatprep.subr.bf16.mxu1 %v2121_v50  ;;  %v796_v1 = vld [vmem:[%s2650_s2 + $0x200] sm:$0xff] }
 0xb8d   :  { %621 = vrot.lane.b32.xlu1 %v619_v62, %s2120_s5  ;;  %v794_v62 = vld [vmem:[%s2650_s2 + $0x1e0] sm:$0xff] }
 0xb8e   :  { %2014 = vrcp.f32 %v609_v3  ;;  %v1930_v3 = vpack.c.bf16 %v796_v1, %v795_v0 }
 0xb98   :  { %v2015_v6 = vpop.eup %2014 }
 0xbff   :  { %v622_v4 = vpop.permute.xlu1 %621 }
 0xc00   :  { %v624_v5 = vadd.f32 %v622_v4, %v618_v63  ;;  %v797_v4 = vld [vmem:[%s2650_s2 + $0x210] sm:$0xff] }
 0xc02   :  { %2016 = vtanh.f32 %v624_v5  ;;  %v698_v29 = vrot.slane %v624_v5, 6  ;;  %v798_v5 = vld [vmem:[%s2650_s2 + $0x220] sm:$0xff] }
 0xc0c   :  { %v2017_v7 = vpop.eup %2016 }
 0xc0d   :  { %v626_v8 = vmul.f32 %v2017_v7, %v2015_v6  ;;  %v1933_v6 = vpack.c.bf16 %v798_v5, %v797_v4 }
 0xc0f   :  { %v627_v9 = vpack.c.bf16 %v626_v8, %v626_v8 }
 0xc11   :  { %v629_v16 = vrot.slane %v627_v9, 1 }
 0xc13   :  { %630 = vrot.lane.b32.xlu0 %v629_v16, %s2120_s5 }
 0xc85   :  { %v631_v10 = vpop.permute.xlu0 %630 }
 0xc86   :  { %1752 = vmatmul.mubr.msk.bf16.vlgmr.msra.gmra.mrb[12].mxu1 %vm111_vm5, %v631_v10 }
 0xc87   :  { %1834 = vmatprep.mubr.msk.f32.mxu1 %vm2122_vm6, %v2118_v56 }
 0xd59   :  { %v669_v11 = vpop.f32.mrb[12].mxu1 }
 0xd5a   :  { %v678_v13 = vrot.slane %v669_v11, 4  ;;  %v671_v27 = vpop.f32.mrb[13].mxu1 }
 0xd5b   :  { %v673_v14 = vpop.f32.mrb[14].mxu1  ;;  %v679_v19 = vrot.slane %v671_v27, 4 }
 0xd5c   :  { %v682_v15 = vadd.f32 %v678_v13, %v2319_v22  ;;  %v674_v17 = vpop.f32.mrb[15].mxu1 }
 0xd5d   :  { %v683_v21 = vadd.f32 %v679_v19, %v2321_v24  ;;  %v903_v17 = vld [vmem:[%s2651_s1] sm:$0xff] }
 0xd5e   :  { %v1753_v18 = vmul.f32 -1.442695, %v682_v15 }
 0xd5f   :  { %v1754_v34 = vmul.f32 -1.442695, %v683_v21 }
 0xd60   :  { %2018 = vpow2.f32 %v1753_v18  ;;  %v799_v18 = vld [vmem:[%s2650_s2 + $0x230] ss:$0 sm:$0xff] }
 0xd61   :  { %2020 = vtanh.f32 %v683_v21 }
 0xd6a   :  { %v2019_v23 = vpop.eup %2018 }
 0xd6b   :  { %v690_v26 = vadd.f32 1.0, %v2019_v23  ;;  %v2021_v28 = vpop.eup %2020 }
 0xd6d   :  { %2022 = vrcp.f32 %v690_v26 }
 0xd6e   :  { %2024 = vpow2.f32 %v1754_v34  ;;  %v889_v34 = vld [vmem:[%s2650_s2 + $0x120] sm:$0xff] }
 0xd77   :  { %v2023_v31 = vpop.eup %2022 }
 0xd78   :  { %v701_v32 = vmul.f32 %v2023_v31, %v2021_v28  ;;  %v700_v33 = vmul.f32 %v2023_v31, %v698_v29  ;;  %v2025_v35 = vpop.eup %2024  ;;  %v894_v28 = vld [vmem:[%s2650_s2 + $0x150] sm:$0xff] }
 0xd79   :  { %v691_v36 = vadd.f32 1.0, %v2025_v35  ;;  %v895_v31 = vpack.c.bf16 %v894_v28, %v894_v28 }
 0xd7a   :  { %703 = vrot.lane.b32.xlu1 %v701_v32, %s2120_s5 }
 0xd7b   :  { %2026 = vrcp.f32 %v691_v36  ;;  %v923_v32 = vsel %vm921_vm8, %v895_v31, 0 }
 0xd85   :  { %v2027_v40 = vpop.eup %2026 }
 0xdec   :  { %v704_v37 = vpop.permute.xlu1 %703 }
 0xded   :  { %v706_v39 = vadd.f32 %v704_v37, %v700_v33  ;;  %v888_v33 = vld [vmem:[%s2650_s2 + $0x110] sm:$0xff]  ;;  %v904_v37 = vld [vmem:[%s2651_s1 + $0x8] sm:$0xff] }
 0xdee   :  { %v892_v35 = vpack.c.bf16 %v889_v34, %v888_v33 }
 0xdef   :  { %2028 = vtanh.f32 %v706_v39  ;;  %v780_v25 = vrot.slane %v706_v39, 6  ;;  %v890_v39 = vld [vmem:[%s2650_s2 + $0x130] sm:$0xff] }
 0xdf9   :  { %v2029_v41 = vpop.eup %2028 }
 0xdfa   :  { %v708_v42 = vmul.f32 %v2029_v41, %v2027_v40  ;;  %v891_v40 = vld [vmem:[%s2650_s2 + $0x140] sm:$0xff] }
 0xdfb   :  { %v893_v41 = vpack.c.bf16 %v891_v40, %v890_v39 }
 0xdfc   :  { %v709_v44 = vpack.c.bf16 %v708_v42, %v708_v42  ;;  %v878_v42 = vld [vmem:[%s2650_s2 + $0x290] sm:$0x3] }
 0xdfe   :  { %v711_v45 = vrot.slane %v709_v44, 2 }
 0xe00   :  { %712 = vrot.lane.b32.xlu0 %v711_v45, %s2120_s5 }
 0xe72   :  { %v713_v46 = vpop.permute.xlu0 %712 }
 0xe73   :  { %1755 = vmatmul.mubr.msk.bf16.vlgmr.msra.gmra.mrb[16].mxu0 %vm111_vm5, %v713_v46  ;;  %v896_v46 = vld [vmem:[%s2650_s2 + $0x160] sm:$0xff] }
 0xe74   :  { %1847 = vmatprep.mubr.msk.bf16.mxu0 %vm2122_vm6, %v2118_v56  ;;  %1844 = vmatpush3.bf16.msra.mxu0 %v892_v35 }
 0xe75   :  { %1845 = vmatprep.subr.bf16.mxu0 %v2118_v56 }
 0xe78   :  { %1846 = vmatpush3.bf16.msra.mxu0 %v893_v41 }
 0xe79   :  { %1859 = vmatprep.subr.bf16.mxu0 %v2118_v56 }
 0xf46   :  { %v751_v47 = vpop.f32.mrb[16].mxu0 }
 0xf47   :  { %v760_v48 = vrot.slane %v751_v47, 2  ;;  %v753_v49 = vpop.f32.mrb[17].mxu0  ;;  %v897_v47 = vld [vmem:[%s2650_s2 + $0x170] sm:$0xff] }
 0xf48   :  { %v755_v51 = vpop.f32.mrb[18].mxu0  ;;  %v761_v57 = vrot.slane %v753_v49, 2  ;;  %v2479_v49 = vpack.c.bf16 %v897_v47, %v896_v46 }
 0xf49   :  { %v764_v52 = vadd.f32 %v760_v48, %v2319_v22  ;;  %v756_v54 = vpop.f32.mrb[19].mxu0  ;;  %v791_v22 = vld [vmem:[%s2650_s2 + $0x1b0] sm:$0xff] }
 0xf4a   :  { %v765_v12 = vadd.f32 %v761_v57, %v2321_v24  ;;  %v793_v24 = vld [vmem:[%s2650_s2 + $0x1d0] sm:$0xff]  ;;  %v1924_v61 = vpack.c.bf16 %v792_v43, %v791_v22 }
 0xf4b   :  { %v1756_v55 = vmul.f32 -1.442695, %v764_v52  ;;  %v1927_v63 = vpack.c.bf16 %v794_v62, %v793_v24  ;;  %v898_v52 = vld [vmem:[%s2650_s2 + $0x180] sm:$0xff]  ;;  %v899_v54 = vld [vmem:[%s2650_s2 + $0x190] sm:$0xff] }
 0xf4c   :  { %1925 = vmatpush3.bf16.msra.mxu1 %v1924_v61  ;;  %v1757_v7 = vmul.f32 -1.442695, %v765_v12 }
 0xf4d   :  { %2030 = vpow2.f32 %v1756_v55  ;;  %1926 = vmatprep.subr.bf16.mxu1 %v2121_v50  ;;  %v2488_v55 = vpack.c.bf16 %v899_v54, %v898_v52 }
 0xf4e   :  { %2032 = vtanh.f32 %v765_v12 }
 0xf50   :  { %1928 = vmatpush3.bf16.msra.mxu1 %v1927_v63 }
 0xf51   :  { %1929 = vmatprep.subr.bf16.mxu1 %v2121_v50 }
 0xf54   :  { %1931 = vmatpush3.bf16.msra.mxu1 %v1930_v3 }
 0xf55   :  { %1932 = vmatprep.subr.bf16.mxu1 %v2121_v50 }
 0xf57   :  { %v2031_v58 = vpop.eup %2030 }
 0xf58   :  { %v772_v59 = vadd.f32 1.0, %v2031_v58  ;;  %v2033_v20 = vpop.eup %2032  ;;  %1934 = vmatpush3.bf16.msra.mxu1 %v1933_v6 }
 0xf59   :  { %1837 = vmatprep.subr.bf16.mxu1 %v2118_v56 }
 0xf5a   :  { %2034 = vrcp.f32 %v772_v59 }
 0xf5b   :  { %2036 = vpow2.f32 %v1757_v7 }
 0xf64   :  { %v2035_v30 = vpop.eup %2034 }
 0xf65   :  { %v783_v60 = vmul.f32 %v2035_v30, %v2033_v20  ;;  %v782_v38 = vmul.f32 %v2035_v30, %v780_v25  ;;  %v2037_v8 = vpop.eup %2036 }
 0xf66   :  { %v773_v9 = vadd.f32 1.0, %v2037_v8 }
 0xf67   :  { %785 = vrot.lane.b32.xlu1 %v783_v60, %s2120_s5 }
 0xf68   :  { %2038 = vrcp.f32 %v773_v9 }
 0xf72   :  { %v2039_v11 = vpop.eup %2038 }
 0xfd9   :  { %v786_v16 = vpop.permute.xlu1 %785 }
 0xfda   :  { %v788_v10 = vadd.f32 %v786_v16, %v782_v38 }
 0xfdc   :  { %2040 = vtanh.f32 %v788_v10 }
 0xfe6   :  { %v2041_v13 = vpop.eup %2040 }
 0xfe7   :  { %v790_v27 = vmul.f32 %v2041_v13, %v2039_v11 }
 0xfe9   :  { %v801_v14 = vrot.slane %v790_v27, 6 }
 0xfeb   :  { %802 = vrot.lane.b32.xlu0 %v801_v14, %s2120_s5 }
 0xfef   :  { %906 = vperm.xlu0 %1945, %v903_v17  }
0x105d   :  { %v803_v15 = vpop.permute.xlu0 %802 }
0x105e   :  { %1835 = vmatmul.mubr.msk.f32.vlgmr.msra.gmra.mrb[16].mxu1 %vm111_vm5, %v803_v15 }
0x105f   :  { %1839 = vmatprep.mubr.msk.bf16.mxu1 %vm2122_vm6, %v2118_v56  ;;  %1838 = vmatpush3.bf16.msra.mxu1 %v923_v32 }
0x1060   :  { %1851 = vmatprep.subr.bf16.mxu1 %v2118_v56 }
0x106e   :  { %v907_v57 = vpop.permute.xlu0 %906 }
0x106f   :  { %vm911_vm10 = vcmp.eq.s32.totalorder %v907_v57, %v2291_v53 }
0x1070   :  { %v913_v58 = vsel %vm911_vm10, 1.0, %v2118_v56 }
0x1131   :  { %v872_v19 = vpop.f32.mrb[16].mxu1 }
0x1132   :  { %v873_v21 = vadd.f32 %v872_v19, %v799_v18  ;;  %v1836_v23 = vpop.f32.mrb[17].mxu1 }
0x1134   :  { %877 = vst.msk [vmem:[%s2652_s3] sm:$0x3] %vm876_vm7, %v873_v21  ;;  %v879_v26 = vmul.f32 0.5, %v873_v21 }
0x1136   :  { %v880_v29 = vmul.f32 1.442695, %v879_v26 }
0x1138   :  { %2042 = vpow2.f32 %v880_v29 }
0x1142   :  { %v2043_v36 = vpop.eup %2042 }
0x1143   :  { %883 = vrot.lane.b32.xlu1 %v2043_v36, %s2123_s8 }
0x1147   :  { %909 = vperm.xlu1 %1944, %v904_v37  }
0x11b5   :  { %v884_v44 = vpop.permute.xlu1 %883 }
0x11b6   :  { %v886_v45 = vmul.f32 %v884_v44, %v878_v42 }
0x11b8   :  { %v887_v48 = vadd.f32 %v886_v45, %v873_v21 }
0x11ba   :  { %v916_v51 = vpack.c.bf16 %v887_v48, %v887_v48 }
0x11bc   :  { %1840 = vmatmul.mubr.msk.bf16.vlgmr.msra.gmra.mrb[20].mxu1 %vm917_vm9, %v916_v51 }
0x11bd   :  { %1852 = vmatpush3.bf16.msra.mxu1 %v2479_v49  ;;  %1855 = vmatprep.mubr.msk.bf16.mxu1 %vm2122_vm6, %v2118_v56 }
0x11be   :  { %1853 = vmatprep.subr.bf16.mxu1 %v2118_v56 }
0x11c1   :  { %1854 = vmatpush3.bf16.msra.mxu1 %v2488_v55 }
0x11c2   :  { %1867 = vmatprep.subr.bf16.mxu1 %v2118_v56 }
0x11c4   :  { %1856 = vmatmul.mubr.bf16.vlgmr.msra.gmra.mrb[24].mxu1 %v2117_v2  ;;  %v902_v2 = vld [vmem:[%s2650_s2 + $0x1a0] ss:$0 sm:$0xff] }
0x11c5   :  { %1868 = vmatpush3.bf16.msra.mxu1 %v2479_v49  ;;  %1871 = vmatprep.mubr.msk.bf16.mxu1 %vm2122_vm6, %v2118_v56 }
0x11c6   :  { %v910_v12 = vpop.permute.xlu1 %909  ;;  %1869 = vmatprep.subr.bf16.mxu1 %v2118_v56 }
0x11c7   :  { %vm912_vm11 = vcmp.eq.s32.totalorder %v910_v12, %v2291_v53 }
0x11c8   :  { %v914_v59 = vsel %vm912_vm11, 1.0, %v2118_v56 }
0x11c9   :  { %v915_v20 = vpack.c.bf16 %v914_v59, %v913_v58  ;;  %1870 = vmatpush3.bf16.msra.mxu1 %v2488_v55 }
0x11ca   :  { %1883 = vmatprep.subr.bf16.mxu1 %v2118_v56 }
0x11cb   :  { %1848 = vmatmul.mubr.msk.bf16.vlgmr.msra.gmra.mrb[20].mxu0 %vm46_vm4, %v915_v20 }
0x11cc   :  { %1860 = vmatpush3.bf16.msra.mxu0 %v2479_v49  ;;  %1863 = vmatprep.mubr.msk.bf16.mxu0 %vm2122_vm6, %v2118_v56 }
0x11cd   :  { %1861 = vmatprep.subr.bf16.mxu0 %v2118_v56 }
0x11d0   :  { %1862 = vmatpush3.bf16.msra.mxu0 %v2488_v55 }
0x11d1   :  { %1875 = vmatprep.subr.bf16.mxu0 %v2118_v56 }
0x128f   :  { %v959_v53 = vpop.f32.mrb[20].mxu1 }
0x1290   :  { %v960_v25 = vadd.f32 %v959_v53, %v902_v2  ;;  %v1841_v30 = vpop.f32.mrb[21].mxu1 }
0x1291   :  { %v962_v60 = vpop.f32.mrb[22].mxu1 }
0x1292   :  { %v1842_v38 = vpop.f32.mrb[23].mxu1  ;;  %v966_v22 = vrot.slane %v960_v25, 6  ;;  %v968_v24 = vrot.slane %v960_v25, 4  ;;  %v970_v1 = vrot.slane %v960_v25, 2 }
0x1294   :  { %v973_v50 = vsel %vm972_vm12, %v960_v25, %v966_v22 }
0x1295   :  { %v974_v0 = vsel %vm921_vm8, %v973_v50, %v968_v24 }
0x1296   :  { %v976_v3 = vsel %vm975_vm13, %v974_v0, %v970_v1 }
0x1297   :  { %v1057_v43 = vpop.f32.mrb[24].mxu1 }
0x1298   :  { %v1857_v61 = vpop.f32.mrb[25].mxu1 }
0x1299   :  { %v1060_v62 = vpop.f32.mrb[26].mxu1 }
0x129a   :  { %v1858_v63 = vpop.f32.mrb[27].mxu1 }
0x129e   :  { %v1014_v4 = vpop.f32.mrb[20].mxu0 }
0x129f   :  { %v2519_v5 = vadd.f32 %v1014_v4, %v976_v3  ;;  %v1849_v6 = vpop.f32.mrb[21].mxu0 }
0x12a0   :  { %v1017_v7 = vpop.f32.mrb[22].mxu0 }
0x12a1   :  { %v1063_v8 = vadd.f32 %v1057_v43, %v2519_v5  ;;  %v2522_v9 = vadd.f32 %v1017_v7, %v976_v3  ;;  %v1850_v16 = vpop.f32.mrb[23].mxu0 }
0x12a3   :  { %2044 = vtanh.f32 %v1063_v8  ;;  %v1761_v11 = vmul.f32 -1.442695, %v1063_v8 }
0x12a5   :  { %2046 = vpow2.f32 %v1761_v11 }
0x12ad   :  { %v2045_v10 = vpop.eup %2044 }
0x12ae   :  { %1073 = vrot.lane.b32.xlu1 %v2045_v10, %s2120_s5 }
0x12af   :  { %v2047_v13 = vpop.eup %2046 }
0x12b0   :  { %v1067_v27 = vadd.f32 1.0, %v2047_v13 }
0x12b2   :  { %2048 = vrcp.f32 %v1067_v27 }
0x12bc   :  { %v2049_v14 = vpop.eup %2048 }
0x12bd   :  { %v1071_v18 = vmul.f32 0.0, %v2049_v14 }
0x1320   :  { %v1074_v15 = vpop.permute.xlu1 %1073 }
0x1321   :  { %v1076_v17 = vmul.f32 %v2049_v14, %v1074_v15 }
0x1323   :  { %1078 = vrot.lane.b32.xlu0 %v1076_v17, %s2119_s28 }
0x1395   :  { %v1079_v19 = vpop.permute.xlu0 %1078 }
0x1396   :  { %v1081_v21 = vadd.f32 %v1079_v19, %v1071_v18 }
0x1398   :  { %2050 = vtanh.f32 %v1081_v21  ;;  %v1147_v47 = vrot.slane %v1081_v21, 6 }
0x13a2   :  { %v2051_v23 = vpop.eup %2050 }
0x13a3   :  { %1084 = vrot.lane.b32.xlu1 %v2051_v23, %s2120_s5 }
0x1415   :  { %v1085_v26 = vpop.permute.xlu1 %1084 }
0x1416   :  { %v2527_v28 = vmul.f32 %v2049_v14, %v1085_v26 }
0x1418   :  { %v1088_v29 = vpack.c.bf16 %v2527_v28, %v2527_v28 }
0x141a   :  { %1090 = vrot.lane.b32.xlu0 %v1088_v29, %s2119_s28 }
0x148c   :  { %v1091_v31 = vpop.permute.xlu0 %1090 }
0x148d   :  { %1864 = vmatmul.mubr.msk.bf16.vlgmr.msra.gmra.mrb[24].mxu0 %vm46_vm4, %v1091_v31 }
0x148e   :  { %1876 = vmatpush3.bf16.msra.mxu0 %v2479_v49  ;;  %1879 = vmatprep.mubr.msk.bf16.mxu0 %vm2122_vm6, %v2118_v56 }
0x148f   :  { %1877 = vmatprep.subr.bf16.mxu0 %v2118_v56 }
0x1492   :  { %1878 = vmatpush3.bf16.msra.mxu0 %v2488_v55 }
0x1493   :  { %1891 = vmatprep.subr.bf16.mxu0 %v2118_v56 }
0x1560   :  { %v1129_v32 = vpop.f32.mrb[24].mxu0 }
0x1561   :  { %v1136_v33 = vrot.slane %v1129_v32, 6  ;;  %v1865_v34 = vpop.f32.mrb[25].mxu0 }
0x1562   :  { %v1132_v35 = vpop.f32.mrb[26].mxu0 }
0x1563   :  { %v1138_v36 = vadd.f32 %v1136_v33, %v2519_v5  ;;  %v1866_v37 = vpop.f32.mrb[27].mxu0 }
0x1565   :  { %2052 = vtanh.f32 %v1138_v36  ;;  %v1763_v40 = vmul.f32 -1.442695, %v1138_v36 }
0x1567   :  { %2054 = vpow2.f32 %v1763_v40 }
0x156f   :  { %v2053_v39 = vpop.eup %2052 }
0x1570   :  { %1151 = vrot.lane.b32.xlu1 %v2053_v39, %s2120_s5 }
0x1571   :  { %v2055_v41 = vpop.eup %2054 }
0x1572   :  { %v1142_v42 = vadd.f32 1.0, %v2055_v41 }
0x1574   :  { %2056 = vrcp.f32 %v1142_v42 }
0x157e   :  { %v2057_v44 = vpop.eup %2056 }
0x157f   :  { %v1149_v48 = vmul.f32 %v2057_v44, %v1147_v47 }
0x15e2   :  { %v1152_v45 = vpop.permute.xlu1 %1151 }
0x15e3   :  { %v1154_v46 = vmul.f32 %v2057_v44, %v1152_v45 }
0x15e5   :  { %1156 = vrot.lane.b32.xlu0 %v1154_v46, %s2119_s28 }
0x1657   :  { %v1157_v51 = vpop.permute.xlu0 %1156 }
0x1658   :  { %v1159_v52 = vadd.f32 %v1157_v51, %v1149_v48 }
0x165a   :  { %2058 = vtanh.f32 %v1159_v52  ;;  %v1226_v0 = vrot.slane %v1159_v52, 6 }
0x1664   :  { %v2059_v54 = vpop.eup %2058 }
0x1665   :  { %1162 = vrot.lane.b32.xlu1 %v2059_v54, %s2120_s5 }
0x16d7   :  { %v1163_v57 = vpop.permute.xlu1 %1162 }
0x16d8   :  { %v1165_v12 = vmul.f32 %v2057_v44, %v1163_v57 }
0x16da   :  { %v1166_v58 = vpack.c.bf16 %v1165_v12, %v1165_v12  ;;  %v1636_v16 = vsel %vm972_vm12, %v2527_v28, %v1165_v12 }
0x16dc   :  { %v1168_v59 = vrot.slane %v1166_v58, 1 }
0x16de   :  { %1169 = vrot.lane.b32.xlu0 %v1168_v59, %s2119_s28 }
0x1750   :  { %v1170_v20 = vpop.permute.xlu0 %1169 }
0x1751   :  { %1872 = vmatmul.mubr.msk.bf16.vlgmr.msra.gmra.mrb[28].mxu1 %vm46_vm4, %v1170_v20 }
0x1752   :  { %1884 = vmatpush3.bf16.msra.mxu1 %v2479_v49  ;;  %1887 = vmatprep.mubr.msk.bf16.mxu1 %vm2122_vm6, %v2118_v56 }
0x1753   :  { %1885 = vmatprep.subr.bf16.mxu1 %v2118_v56 }
0x1756   :  { %1886 = vmatpush3.bf16.msra.mxu1 %v2488_v55 }
0x1757   :  { %1899 = vmatprep.subr.bf16.mxu1 %v2118_v56 }
0x1824   :  { %v1208_v2 = vpop.f32.mrb[28].mxu1 }
0x1825   :  { %v1215_v53 = vrot.slane %v1208_v2, 4  ;;  %v1873_v25 = vpop.f32.mrb[29].mxu1 }
0x1826   :  { %v1211_v30 = vpop.f32.mrb[30].mxu1 }
0x1827   :  { %v1217_v60 = vadd.f32 %v1215_v53, %v2519_v5  ;;  %v1874_v38 = vpop.f32.mrb[31].mxu1 }
0x1829   :  { %2060 = vtanh.f32 %v1217_v60  ;;  %v1765_v43 = vmul.f32 -1.442695, %v1217_v60 }
0x182b   :  { %2062 = vpow2.f32 %v1765_v43 }
0x1833   :  { %v2061_v22 = vpop.eup %2060 }
0x1834   :  { %1230 = vrot.lane.b32.xlu1 %v2061_v22, %s2120_s5 }
0x1835   :  { %v2063_v24 = vpop.eup %2062 }
0x1836   :  { %v1221_v50 = vadd.f32 1.0, %v2063_v24 }
0x1838   :  { %2064 = vrcp.f32 %v1221_v50 }
0x1842   :  { %v2065_v61 = vpop.eup %2064 }
0x1843   :  { %v1228_v1 = vmul.f32 %v2065_v61, %v1226_v0 }
0x18a6   :  { %v1231_v62 = vpop.permute.xlu1 %1230 }
0x18a7   :  { %v1233_v63 = vmul.f32 %v2065_v61, %v1231_v62 }
0x18a9   :  { %1235 = vrot.lane.b32.xlu0 %v1233_v63, %s2119_s28 }
0x191b   :  { %v1236_v3 = vpop.permute.xlu0 %1235 }
0x191c   :  { %v1238_v4 = vadd.f32 %v1236_v3, %v1228_v1 }
0x191e   :  { %2066 = vtanh.f32 %v1238_v4  ;;  %v1305_v34 = vrot.slane %v1238_v4, 6 }
0x1928   :  { %v2067_v6 = vpop.eup %2066 }
0x1929   :  { %1241 = vrot.lane.b32.xlu1 %v2067_v6, %s2120_s5 }
0x199b   :  { %v1242_v7 = vpop.permute.xlu1 %1241 }
0x199c   :  { %v1244_v8 = vmul.f32 %v2065_v61, %v1242_v7 }
0x199e   :  { %v1245_v10 = vpack.c.bf16 %v1244_v8, %v1244_v8  ;;  %v1637_v11 = vsel %vm921_vm8, %v1636_v16, %v1244_v8 }
0x19a0   :  { %v1247_v13 = vrot.slane %v1245_v10, 2 }
0x19a2   :  { %1248 = vrot.lane.b32.xlu0 %v1247_v13, %s2119_s28 }
0x1a14   :  { %v1249_v27 = vpop.permute.xlu0 %1248 }
0x1a15   :  { %1880 = vmatmul.mubr.msk.bf16.vlgmr.msra.gmra.mrb[28].mxu0 %vm46_vm4, %v1249_v27 }
0x1a16   :  { %1892 = vmatpush3.bf16.msra.mxu0 %v2479_v49  ;;  %1895 = vmatprep.mubr.msk.bf16.mxu0 %vm2122_vm6, %v2118_v56 }
0x1a17   :  { %1893 = vmatprep.subr.bf16.mxu0 %v2118_v56 }
0x1a1a   :  { %1894 = vmatpush3.bf16.msra.mxu0 %v2488_v55 }
0x1a1b   :  { %1907 = vmatprep.subr.bf16.mxu0 %v2118_v56 }
0x1ae8   :  { %v1287_v14 = vpop.f32.mrb[28].mxu0 }
0x1ae9   :  { %v1294_v15 = vrot.slane %v1287_v14, 2  ;;  %v1881_v17 = vpop.f32.mrb[29].mxu0 }
0x1aea   :  { %v1290_v18 = vpop.f32.mrb[30].mxu0 }
0x1aeb   :  { %v1296_v19 = vadd.f32 %v1294_v15, %v2519_v5  ;;  %v1882_v21 = vpop.f32.mrb[31].mxu0 }
0x1aed   :  { %2068 = vtanh.f32 %v1296_v19  ;;  %v1767_v26 = vmul.f32 -1.442695, %v1296_v19 }
0x1aef   :  { %2070 = vpow2.f32 %v1767_v26 }
0x1af7   :  { %v2069_v23 = vpop.eup %2068 }
0x1af8   :  { %1309 = vrot.lane.b32.xlu1 %v2069_v23, %s2120_s5 }
0x1af9   :  { %v2071_v28 = vpop.eup %2070 }
0x1afa   :  { %v1300_v29 = vadd.f32 1.0, %v2071_v28 }
0x1afc   :  { %2072 = vrcp.f32 %v1300_v29 }
0x1b06   :  { %v2073_v31 = vpop.eup %2072 }
0x1b07   :  { %v1307_v35 = vmul.f32 %v2073_v31, %v1305_v34 }
0x1b6a   :  { %v1310_v32 = vpop.permute.xlu1 %1309 }
0x1b6b   :  { %v1312_v33 = vmul.f32 %v2073_v31, %v1310_v32 }
0x1b6d   :  { %1314 = vrot.lane.b32.xlu0 %v1312_v33, %s2119_s28 }
0x1bdf   :  { %v1315_v36 = vpop.permute.xlu0 %1314 }
0x1be0   :  { %v1317_v37 = vadd.f32 %v1315_v36, %v1307_v35 }
0x1be2   :  { %2074 = vtanh.f32 %v1317_v37  ;;  %v1381_v53 = vrot.slane %v1317_v37, 6 }
0x1bec   :  { %v2075_v5 = vpop.eup %2074 }
0x1bed   :  { %1320 = vrot.lane.b32.xlu1 %v2075_v5, %s2120_s5 }
0x1c5f   :  { %v1321_v39 = vpop.permute.xlu1 %1320 }
0x1c60   :  { %v1323_v40 = vmul.f32 %v2073_v31, %v1321_v39 }
0x1c62   :  { %v1324_v41 = vpack.c.bf16 %v1323_v40, %v1323_v40  ;;  %v2571_v42 = vsel %vm975_vm13, %v1637_v11, %v1323_v40 }
0x1c64   :  { %v1326_v44 = vrot.slane %v1324_v41, 3 }
0x1c66   :  { %1327 = vrot.lane.b32.xlu0 %v1326_v44, %s2119_s28 }
0x1cd8   :  { %v1328_v45 = vpop.permute.xlu0 %1327 }
0x1cd9   :  { %1888 = vmatmul.mubr.msk.bf16.vlgmr.msra.gmra.mrb[32].mxu1 %vm46_vm4, %v1328_v45 }
0x1cda   :  { %1900 = vmatpush3.bf16.msra.mxu1 %v2479_v49  ;;  %1903 = vmatprep.mubr.msk.bf16.mxu1 %vm2122_vm6, %v2118_v56 }
0x1cdb   :  { %1901 = vmatprep.subr.bf16.mxu1 %v2118_v56 }
0x1cde   :  { %1902 = vmatpush3.bf16.msra.mxu1 %v2488_v55 }
0x1cdf   :  { %1915 = vmatprep.subr.bf16.mxu1 %v2118_v56 }
0x1dac   :  { %v1366_v46 = vpop.f32.mrb[32].mxu1 }
0x1dad   :  { %v1372_v47 = vadd.f32 %v1366_v46, %v2522_v9  ;;  %v1889_v48 = vpop.f32.mrb[33].mxu1 }
0x1dae   :  { %v1369_v51 = vpop.f32.mrb[34].mxu1 }
0x1daf   :  { %2076 = vtanh.f32 %v1372_v47  ;;  %v1890_v52 = vpop.f32.mrb[35].mxu1  ;;  %v1769_v57 = vmul.f32 -1.442695, %v1372_v47 }
0x1db1   :  { %2078 = vpow2.f32 %v1769_v57 }
0x1db9   :  { %v2077_v54 = vpop.eup %2076 }
0x1dba   :  { %1385 = vrot.lane.b32.xlu1 %v2077_v54, %s2120_s5 }
0x1dbb   :  { %v2079_v12 = vpop.eup %2078 }
0x1dbc   :  { %v1376_v58 = vadd.f32 1.0, %v2079_v12 }
0x1dbe   :  { %2080 = vrcp.f32 %v1376_v58 }
0x1dc8   :  { %v2081_v59 = vpop.eup %2080 }
0x1dc9   :  { %v1383_v25 = vmul.f32 %v2081_v59, %v1381_v53 }
0x1e2c   :  { %v1386_v20 = vpop.permute.xlu1 %1385 }
0x1e2d   :  { %v1388_v2 = vmul.f32 %v2081_v59, %v1386_v20 }
0x1e2f   :  { %1390 = vrot.lane.b32.xlu0 %v1388_v2, %s2119_s28 }
0x1ea1   :  { %v1391_v30 = vpop.permute.xlu0 %1390 }
0x1ea2   :  { %v1393_v60 = vadd.f32 %v1391_v30, %v1383_v25 }
0x1ea4   :  { %2082 = vtanh.f32 %v1393_v60 }
0x1eae   :  { %v2083_v38 = vpop.eup %2082 }
0x1eaf   :  { %1396 = vrot.lane.b32.xlu1 %v2083_v38, %s2120_s5 }
0x1f21   :  { %v1397_v22 = vpop.permute.xlu1 %1396 }
0x1f22   :  { %v2585_v43 = vmul.f32 %v2081_v59, %v1397_v22 }
0x1f24   :  { %v1400_v24 = vpack.c.bf16 %v2585_v43, %v2585_v43 }
0x1f26   :  { %1402 = vrot.lane.b32.xlu0 %v1400_v24, %s2119_s28 }
0x1f98   :  { %v1403_v50 = vpop.permute.xlu0 %1402 }
0x1f99   :  { %1896 = vmatmul.mubr.msk.bf16.vlgmr.msra.gmra.mrb[32].mxu0 %vm46_vm4, %v1403_v50 }
0x1f9a   :  { %1908 = vmatpush3.bf16.msra.mxu0 %v2479_v49  ;;  %1911 = vmatprep.mubr.msk.bf16.mxu0 %vm2122_vm6, %v2118_v56 }
0x1f9b   :  { %1909 = vmatprep.subr.bf16.mxu0 %v2118_v56 }
0x1f9e   :  { %1910 = vmatpush3.bf16.msra.mxu0 %v2488_v55  ;;  %v1459_v55 = vrot.slane %v1393_v60, 6 }
0x206c   :  { %v1441_v61 = vpop.f32.mrb[32].mxu0 }
0x206d   :  { %v1448_v62 = vrot.slane %v1441_v61, 6  ;;  %v1897_v63 = vpop.f32.mrb[33].mxu0 }
0x206e   :  { %v1444_v0 = vpop.f32.mrb[34].mxu0 }
0x206f   :  { %v1450_v1 = vadd.f32 %v1448_v62, %v2522_v9  ;;  %v1898_v3 = vpop.f32.mrb[35].mxu0 }
0x2070   :  { %v1644_v3 = vld [vmem:[%s2650_s2 + $0x260] sm:$0xff] }
0x2071   :  { %2084 = vtanh.f32 %v1450_v1  ;;  %v1771_v6 = vmul.f32 -1.442695, %v1450_v1  ;;  %v1643_v1 = vld [vmem:[%s2650_s2 + $0x250] sm:$0xff] }
0x2073   :  { %2086 = vpow2.f32 %v1771_v6  ;;  %v1645_v6 = vld [vmem:[%s2650_s2 + $0x270] sm:$0xff] }
0x207b   :  { %v2085_v4 = vpop.eup %2084 }
0x207c   :  { %1463 = vrot.lane.b32.xlu1 %v2085_v4, %s2120_s5 }
0x207d   :  { %v2087_v49 = vpop.eup %2086 }
0x207e   :  { %v1454_v7 = vadd.f32 1.0, %v2087_v49  ;;  %v1647_v49 = vpack.c.bf16 %v1645_v6, %v1644_v3 }
0x2080   :  { %2088 = vrcp.f32 %v1454_v7 }
0x208a   :  { %v2089_v8 = vpop.eup %2088 }
0x208b   :  { %v1461_v11 = vmul.f32 %v2089_v8, %v1459_v55 }
0x20ee   :  { %v1464_v16 = vpop.permute.xlu1 %1463 }
0x20ef   :  { %v1466_v10 = vmul.f32 %v2089_v8, %v1464_v16 }
0x20f1   :  { %1468 = vrot.lane.b32.xlu0 %v1466_v10, %s2119_s28 }
0x2163   :  { %v1469_v13 = vpop.permute.xlu0 %1468 }
0x2164   :  { %v1471_v27 = vadd.f32 %v1469_v13, %v1461_v11  ;;  %v1648_v13 = vld [vmem:[%s2650_s2 + $0x280] ss:$0 sm:$0xff] }
0x2166   :  { %2090 = vtanh.f32 %v1471_v27  ;;  %v1538_v40 = vrot.slane %v1471_v27, 6 }
0x2170   :  { %v2091_v14 = vpop.eup %2090 }
0x2171   :  { %1474 = vrot.lane.b32.xlu1 %v2091_v14, %s2120_s5 }
0x21e3   :  { %v1475_v15 = vpop.permute.xlu1 %1474 }
0x21e4   :  { %v1477_v17 = vmul.f32 %v2089_v8, %v1475_v15 }
0x21e6   :  { %v1478_v18 = vpack.c.bf16 %v1477_v17, %v1477_v17  ;;  %v1639_v51 = vsel %vm972_vm12, %v2585_v43, %v1477_v17 }
0x21e8   :  { %v1480_v19 = vrot.slane %v1478_v18, 1 }
0x21ea   :  { %1481 = vrot.lane.b32.xlu0 %v1480_v19, %s2119_s28 }
0x225c   :  { %v1482_v21 = vpop.permute.xlu0 %1481 }
0x225d   :  { %1904 = vmatmul.mubr.msk.bf16.vlgmr.msra.gmra.mrb[36].mxu1 %vm46_vm4, %v1482_v21 }
0x225e   :  { %1919 = vmatprep.mubr.msk.bf16.mxu1 %vm2122_vm6, %v2118_v56 }
0x2330   :  { %v1520_v23 = vpop.f32.mrb[36].mxu1 }
0x2331   :  { %v1527_v26 = vrot.slane %v1520_v23, 4  ;;  %v1905_v28 = vpop.f32.mrb[37].mxu1 }
0x2332   :  { %v1523_v29 = vpop.f32.mrb[38].mxu1 }
0x2333   :  { %v1529_v31 = vadd.f32 %v1527_v26, %v2522_v9  ;;  %v1906_v32 = vpop.f32.mrb[39].mxu1 }
0x2335   :  { %2092 = vtanh.f32 %v1529_v31  ;;  %v1773_v34 = vmul.f32 -1.442695, %v1529_v31 }
0x2337   :  { %2094 = vpow2.f32 %v1773_v34 }
0x233f   :  { %v2093_v33 = vpop.eup %2092 }
0x2340   :  { %1542 = vrot.lane.b32.xlu1 %v2093_v33, %s2120_s5 }
0x2341   :  { %v2095_v35 = vpop.eup %2094 }
0x2342   :  { %v1533_v36 = vadd.f32 1.0, %v2095_v35 }
0x2344   :  { %2096 = vrcp.f32 %v1533_v36 }
0x234e   :  { %v2097_v37 = vpop.eup %2096 }
0x234f   :  { %v1540_v41 = vmul.f32 %v2097_v37, %v1538_v40 }
0x23b2   :  { %v1543_v5 = vpop.permute.xlu1 %1542 }
0x23b3   :  { %v1545_v39 = vmul.f32 %v2097_v37, %v1543_v5 }
0x23b5   :  { %1547 = vrot.lane.b32.xlu0 %v1545_v39, %s2119_s28 }
0x2427   :  { %v1548_v44 = vpop.permute.xlu0 %1547 }
0x2428   :  { %v1550_v45 = vadd.f32 %v1548_v44, %v1540_v41 }
0x242a   :  { %2098 = vtanh.f32 %v1550_v45  ;;  %v1617_v61 = vrot.slane %v1550_v45, 6 }
0x2434   :  { %v2099_v46 = vpop.eup %2098 }
0x2435   :  { %1553 = vrot.lane.b32.xlu1 %v2099_v46, %s2120_s5 }
0x24a7   :  { %v1554_v47 = vpop.permute.xlu1 %1553 }
0x24a8   :  { %v1556_v48 = vmul.f32 %v2097_v37, %v1554_v47 }
0x24aa   :  { %v1557_v52 = vpack.c.bf16 %v1556_v48, %v1556_v48  ;;  %v1640_v54 = vsel %vm921_vm8, %v1639_v51, %v1556_v48 }
0x24ac   :  { %v1559_v57 = vrot.slane %v1557_v52, 2 }
0x24ae   :  { %1560 = vrot.lane.b32.xlu0 %v1559_v57, %s2119_s28 }
0x2520   :  { %v1561_v12 = vpop.permute.xlu0 %1560 }
0x2521   :  { %1912 = vmatmul.mubr.msk.bf16.vlgmr.msra.gmra.mrb[36].mxu0 %vm46_vm4, %v1561_v12 }
0x25f4   :  { %v1599_v58 = vpop.f32.mrb[36].mxu0 }
0x25f5   :  { %v1606_v59 = vrot.slane %v1599_v58, 2  ;;  %v1913_v20 = vpop.f32.mrb[37].mxu0 }
0x25f6   :  { %v1602_v2 = vpop.f32.mrb[38].mxu0 }
0x25f7   :  { %v1608_v53 = vadd.f32 %v1606_v59, %v2522_v9  ;;  %v1914_v25 = vpop.f32.mrb[39].mxu0  ;;  %v1642_v9 = vld [vmem:[%s2650_s2 + $0x240] sm:$0xff] }
0x25f8   :  { %v1646_v4 = vpack.c.bf16 %v1643_v1, %v1642_v9 }
0x25f9   :  { %2100 = vtanh.f32 %v1608_v53  ;;  %v1775_v60 = vmul.f32 -1.442695, %v1608_v53 }
0x25fa   :  { %1916 = vmatpush3.bf16.msra.mxu1 %v1646_v4 }
0x25fb   :  { %2102 = vpow2.f32 %v1775_v60  ;;  %1917 = vmatprep.subr.bf16.mxu1 %v2118_v56 }
0x25fe   :  { %1918 = vmatpush3.bf16.msra.mxu1 %v1647_v49 }
0x2603   :  { %v2101_v30 = vpop.eup %2100 }
0x2604   :  { %1621 = vrot.lane.b32.xlu1 %v2101_v30, %s2120_s5 }
0x2605   :  { %v2103_v38 = vpop.eup %2102 }
0x2606   :  { %v1612_v22 = vadd.f32 1.0, %v2103_v38 }
0x2608   :  { %2104 = vrcp.f32 %v1612_v22 }
0x2612   :  { %v2105_v43 = vpop.eup %2104 }
0x2613   :  { %v1619_v62 = vmul.f32 %v2105_v43, %v1617_v61 }
0x2676   :  { %v1622_v24 = vpop.permute.xlu1 %1621 }
0x2677   :  { %v1624_v50 = vmul.f32 %v2105_v43, %v1622_v24 }
0x2679   :  { %1626 = vrot.lane.b32.xlu0 %v1624_v50, %s2119_s28 }
0x26eb   :  { %v1627_v63 = vpop.permute.xlu0 %1626 }
0x26ec   :  { %v1629_v0 = vadd.f32 %v1627_v63, %v1619_v62 }
0x26ee   :  { %2106 = vtanh.f32 %v1629_v0 }
0x26f8   :  { %v2107_v7 = vpop.eup %2106 }
0x26f9   :  { %1632 = vrot.lane.b32.xlu1 %v2107_v7, %s2120_s5 }
0x276b   :  { %v1633_v8 = vpop.permute.xlu1 %1632 }
0x276c   :  { %v1635_v16 = vmul.f32 %v2105_v43, %v1633_v8 }
0x276e   :  { %v1641_v10 = vsel %vm975_vm13, %v1640_v54, %v1635_v16 }
0x276f   :  { %v1649_v55 = vpack.c.bf16 %v1641_v10, %v2571_v42 }
0x2771   :  { %1651 = vrot.lane.b32.xlu0 %v1649_v55, %s2119_s28 }
0x27e3   :  { %v1652_v11 = vpop.permute.xlu0 %1651 }
0x27e4   :  { %1920 = vmatmul.mubr.msk.bf16.vlgmr.msra.gmra.mrb[40].mxu1 %vm46_vm4, %v1652_v11 }
0x28b7   :  { %v1690_v56 = vpop.f32.mrb[40].mxu1 }
0x28b8   :  { %v1691_v27 = vadd.f32 %v1690_v56, %v1648_v13  ;;  %v1921_v14 = vpop.f32.mrb[41].mxu1 }
0x28b9   :  { %v1693_v15 = vpop.f32.mrb[42].mxu1 }
0x28ba   :  { %v1694_v17 = vadd.f32 %v1693_v15, %v1648_v13  ;;  %v1922_v18 = vpop.f32.mrb[43].mxu1  ;;  %v1697_v19 = vsel %vm46_vm4, %v1691_v27, -inf }
0x28bb   :  { %1698 = vmax.xlane.f32.xlu1 %v1697_v19 }
0x28bc   :  { %v1700_v42 = vsel %vm46_vm4, %v1694_v17, -inf }
0x28bd   :  { %1701 = vmax.xlane.f32.xlu0 %v1700_v42 }
0x2948   :  { %v1699_v21 = vpop.xlane.xlu1 %1698 }
0x2949   :  { %v1703_v23 = vsub.f32 %v1691_v27, %v1699_v21 }
0x294a   :  { %v1702_v26 = vpop.xlane.xlu0 %1701 }
0x294b   :  { %v1705_v28 = vmul.f32 1.442695, %v1703_v23  ;;  %v1704_v29 = vsub.f32 %v1694_v17, %v1702_v26 }
0x294d   :  { %2108 = vpow2.f32 %v1705_v28  ;;  %v1707_v31 = vmul.f32 1.442695, %v1704_v29 }
0x294f   :  { %2110 = vpow2.f32 %v1707_v31 }
0x2957   :  { %v2109_v32 = vpop.eup %2108 }
0x2958   :  { %v1709_v33 = vsel %vm46_vm4, %v2109_v32, 0.0 }
0x2959   :  { %v2111_v34 = vpop.eup %2110  ;;  %1710 = vadd.xlane.f32.xlu0 %v1709_v33 }
0x295a   :  { %v1712_v35 = vsel %vm46_vm4, %v2111_v34, 0.0 }
0x295b   :  { %1713 = vadd.xlane.f32.xlu1 %v1712_v35 }
0x29e6   :  { %v1711_v36 = vpop.xlane.xlu0 %1710 }
0x29e7   :  { %2112 = vlog2.f32 %v1711_v36 }
0x29e8   :  { %v1714_v37 = vpop.xlane.xlu1 %1713 }
0x29e9   :  { %2114 = vlog2.f32 %v1714_v37 }
0x29f1   :  { %v2113_v5 = vpop.eup %2112 }
0x29f2   :  { %v1716_v39 = vmul.f32 0.6931472, %v2113_v5 }
0x29f3   :  { %v2115_v40 = vpop.eup %2114 }
0x29f4   :  { %v1719_v41 = vadd.f32 %v1716_v39, %v1699_v21  ;;  %v1718_v44 = vmul.f32 0.6931472, %v2115_v40 }
0x29f6   :  { %v1721_v45 = vsub.f32 %v1691_v27, %v1719_v41  ;;  %v1720_v46 = vadd.f32 %v1718_v44, %v1702_v26 }
0x29f8   :  { %1723 = vst.msk [vmem:[%s2653_s4] sm:$0xff] %vm46_vm4, %v1721_v45  ;;  %v1722_v47 = vsub.f32 %v1694_v17, %v1720_v46 }
0x29fa   :  { %1724 = vst.msk [vmem:[%s2653_s4 + $0x8] sm:$0xff] %vm46_vm4, %v1722_v47 }

</bundles_post_ra>
